<compile_context>
chip_gen: v6e
topology: v6e:2x2x1
jax: 0.10.0
libtpu: 0.0.40
codegen_flags: <defaults>
</compile_context>

<pallas_src>
import functools

import jax
import jax.numpy as jnp
from jax.experimental import pallas as pl
from jax.experimental.pallas import tpu as pltpu

HIDDEN = 32
APP_DIM = 2 * HIDDEN            # 64
LOC_DIM = 16
TIME_DIM = HIDDEN               # 32
WALK_LEN = 5
N_NEIGH = WALK_LEN + 1          # the walk includes the start node
APP_SLAB = APP_DIM * (N_NEIGH + 1)   # 448 = [x_app(64) | 6 * nb(64)]
LOC_SLAB = LOC_DIM * (N_NEIGH + 1)   # 112 = [x_loc(16) | 6 * nb(16)]
TILE_B = 1024                   # big batch tile: per-step overhead dominates small tiles


# ----------------------------- Pallas kernel ------------------------------ #
def gin_app_kernel(slab_app_ref, slab_loc_ref, x_time_ref,
                   w_app_ref, b_app_ref, w_loc_ref, b_loc_ref,
                   w_att_head_ref, w_att_tail_ref, b_att_ref,
                   out_ref):
    # slab_app (T, 448) bf16 = [x_app | nb0..nb5]     w_app (448, H) bf16
    # slab_loc (T, 112) bf16 = [x_loc | nb0..nb5]     w_loc (112, H) bf16
    # x_time   (T, H)   bf16
    # b_app / b_loc (1, H) f32
    # w_att_head (448, 1) bf16 (neighbor rows are zero), w_att_tail (H, 1) f32
    # b_att (1, 1) f32 in SMEM
    # out (T, H) f32
    slab_app = slab_app_ref[...]

    # ---- SameTypeAggregator (app/loc): one MXU matmul each; the neighbor sum
    #      is folded into the matmul via the K-replicated neighbor weight. ----
    f_app = jnp.maximum(
        jnp.dot(slab_app, w_app_ref[...], preferred_element_type=jnp.float32)
        + b_app_ref[...], 0.0)                                        # (T, H) f32
    f_loc = jnp.maximum(
        jnp.dot(slab_loc_ref[...], w_loc_ref[...], preferred_element_type=jnp.float32)
        + b_loc_ref[...], 0.0)                                        # (T, H) f32
    x_time = x_time_ref[...].astype(jnp.float32)                      # (T, H) f32

    # ---- CrossTypeAttention, unrolled: logit_i = w_head.x_app + w_tail.f_i + b.
    #      The head term is a matmul over the full app slab (zero rows for the
    #      neighbor block) so no slab slicing is needed in-kernel. ----
    base = (jnp.dot(slab_app, w_att_head_ref[...], preferred_element_type=jnp.float32)
            + b_att_ref[0, 0])                                        # (T, 1)
    l_app = jnp.dot(f_app, w_att_tail_ref[...], preferred_element_type=jnp.float32) + base
    l_loc = jnp.dot(f_loc, w_att_tail_ref[...], preferred_element_type=jnp.float32) + base
    l_time = jnp.dot(x_time, w_att_tail_ref[...], preferred_element_type=jnp.float32) + base

    # 3-way softmax over the candidate features, fully elementwise.
    m = jnp.maximum(jnp.maximum(l_app, l_loc), l_time)
    e_app = jnp.exp(l_app - m)
    e_loc = jnp.exp(l_loc - m)
    e_time = jnp.exp(l_time - m)
    inv = pl.reciprocal(e_app + e_loc + e_time, approx=True)          # EUP slot

    out_ref[...] = ((e_app * inv) * f_app
                    + (e_loc * inv) * f_loc
                    + (e_time * inv) * x_time)


# ----------------------------- Pallas wrapper ------------------------------ #
def _pad_axis(x, axis, total):
    pad = total - x.shape[axis]
    if pad == 0:
        return x
    widths = [(0, 0)] * x.ndim
    widths[axis] = (0, pad)
    return jnp.pad(x, widths)


@functools.partial(jax.jit, static_argnames=("tile_b",))
def gin_app_pallas(params, x_app_t, app_nb, x_loc_t, loc_nb, x_time_t, *,
                   tile_b=TILE_B):
    """Batched forward: inputs are per-target-node gathered features.

    x_app_t (B, 2H), app_nb (B, N_NEIGH, 2H), x_loc_t (B, LOC),
    loc_nb (B, N_NEIGH, LOC), x_time_t (B, H)  ->  (B, H)
    """
    B = x_app_t.shape[0]
    n_tiles = pl.cdiv(B, tile_b)
    b_pad = n_tiles * tile_b

    bf16 = lambda a: a.astype(jnp.bfloat16)

    # Lane-dense streamed slabs. reshape is a free view of the gather output;
    # the concat fuses with the bf16 cast (no extra HBM pass like the old
    # transpose). Neighbors stay in natural row-major [nb0 | nb1 | ... ] order.
    slab_app = jnp.concatenate(
        [bf16(x_app_t), bf16(app_nb).reshape(B, N_NEIGH * APP_DIM)], axis=-1)   # (B, 448)
    slab_loc = jnp.concatenate(
        [bf16(x_loc_t), bf16(loc_nb).reshape(B, N_NEIGH * LOC_DIM)], axis=-1)   # (B, 112)
    x_time_p = _pad_axis(bf16(x_time_t), 0, b_pad)
    slab_app = _pad_axis(slab_app, 0, b_pad)
    slab_loc = _pad_axis(slab_loc, 0, b_pad)

    # Parameters (nn.Linear stored as (in, out); y = x @ W + b).  The neighbor
    # sum is folded into the MXU by replicating the neighbor block along K.
    w_app_self = params["w_app"][:APP_DIM]                          # (2H, H)
    w_app_nb = params["w_app"][APP_DIM:]                            # (2H, H)
    w_app_big = bf16(jnp.concatenate(
        [w_app_self, jnp.tile(w_app_nb, (N_NEIGH, 1))], axis=0))    # (448, H)
    w_loc_self = params["w_loc"][:LOC_DIM]
    w_loc_nb = params["w_loc"][LOC_DIM:]
    w_loc_big = bf16(jnp.concatenate(
        [w_loc_self, jnp.tile(w_loc_nb, (N_NEIGH, 1))], axis=0))    # (112, H)
    b_app = params["b_app"].astype(jnp.float32)                     # (1, H)
    b_loc = params["b_loc"].astype(jnp.float32)                     # (1, H)

    # Attention head weight folded onto the app slab (zero rows for neighbors).
    w_att_head = params["w_att"][:, :APP_DIM].T                     # (2H, 1)
    w_att_head_big = bf16(jnp.concatenate(
        [w_att_head, jnp.zeros((N_NEIGH * APP_DIM, 1), w_att_head.dtype)], axis=0))  # (448, 1)
    # Tail weight: pre-round to bf16 values, keep f32 dtype (exact f32 dot in kernel).
    w_att_tail = bf16(params["w_att"][:, APP_DIM:].T).astype(jnp.float32)             # (H, 1)
    b_att = params["b_att"].astype(jnp.float32)                     # (1, 1) -> SMEM

    feat_spec = lambda d: pl.BlockSpec((tile_b, d), lambda b: (b, 0))
    resident = lambda shp: pl.BlockSpec(shp, lambda b: (0, 0))      # stays in VMEM across steps

    out = pl.pallas_call(
        gin_app_kernel,
        out_shape=jax.ShapeDtypeStruct((b_pad, HIDDEN), jnp.float32),
        grid=(n_tiles,),
        in_specs=[
            feat_spec(APP_SLAB), feat_spec(LOC_SLAB), feat_spec(TIME_DIM),
            resident((APP_SLAB, HIDDEN)), resident((1, HIDDEN)),
            resident((LOC_SLAB, HIDDEN)), resident((1, HIDDEN)),
            resident((APP_SLAB, 1)), resident((HIDDEN, 1)),
            pl.BlockSpec(memory_space=pltpu.MemorySpace.SMEM),
        ],
        out_specs=pl.BlockSpec((tile_b, HIDDEN), lambda b: (b, 0)),
        compiler_params=pltpu.CompilerParams(
            dimension_semantics=("parallel",)),   # lets v7x shard the batch grid over 2 TCs
    )(slab_app, slab_loc, x_time_p,
      w_app_big, b_app, w_loc_big, b_loc,
      w_att_head_big, w_att_tail, b_att)
    return out[:B]


# ------------------------------- JAX glue ---------------------------------- #
def weighted_random_walk(key, edge_index, edge_weight, start_node, walk_length):
    """Distributionally equivalent to the torch.multinomial walk (graph sampling
    is data-dependent gather/sampling, so it stays in JAX glue, not the kernel)."""
    log_w = jnp.log(edge_weight)
    cur = jnp.asarray(start_node, jnp.int32)
    walk = [cur]
    for _ in range(walk_length):
        key, sub = jax.random.split(key)
        logits = jnp.where(edge_index[0] == cur, log_w, -jnp.inf)
        e = jax.random.categorical(sub, logits)       # sample an outgoing edge
        cur = edge_index[1, e].astype(jnp.int32)
        walk.append(cur)
    return jnp.stack(walk)                            # (WALK_LEN + 1,)


def gather_inputs(data, target_nodes, key):
    """Random walks + feature gathers for a batch of target nodes."""
    # TODO(synk): for production-size graphs, pass the walk indices via
    # PrefetchScalarGridSpec scalar prefetch and gather rows in-kernel instead
    # of materializing (B, N_NEIGH, feat) in HBM.
    B = target_nodes.shape[0]
    k_app, k_loc = jax.random.split(key)
    walk_b = jax.vmap(weighted_random_walk, in_axes=(0, None, None, 0, None))
    app_walks = walk_b(jax.random.split(k_app, B), data["edge_index_app"],
                       data["edge_weight_app"], target_nodes, WALK_LEN)   # (B, 6)
    loc_walks = walk_b(jax.random.split(k_loc, B), data["edge_index_loc"],
                       data["edge_weight_loc"], target_nodes, WALK_LEN)
    return (data["x_app"][target_nodes],     # (B, 2H)
            data["x_app"][app_walks],        # (B, 6, 2H)
            data["x_loc"][target_nodes],     # (B, LOC)
            data["x_loc"][loc_walks],        # (B, 6, LOC)
            data["x_time"][target_nodes])    # (B, H)


def gin_app_forward(params, data, target_nodes, key, *, tile_b=TILE_B):
    target_nodes = jnp.atleast_1d(jnp.asarray(target_nodes, jnp.int32))
    feats = gather_inputs(data, target_nodes, key)
    return gin_app_pallas(params, *feats, tile_b=tile_b)


def init_params(key):
    ks = jax.random.split(key, 6)
    scale = 0.1
    # nn.Linear weights stored in (in, out) layout; y = x @ W + b.
    return {
        "w_app": scale * jax.random.normal(ks[0], (2 * APP_DIM, HIDDEN), jnp.float32),
        "b_app": scale * jax.random.normal(ks[1], (1, HIDDEN), jnp.float32),
        "w_loc": scale * jax.random.normal(ks[2], (2 * LOC_DIM, HIDDEN), jnp.float32),
        "b_loc": scale * jax.random.normal(ks[3], (1, HIDDEN), jnp.float32),
        "w_att": scale * jax.random.normal(ks[4], (1, 3 * HIDDEN), jnp.float32),
        "b_att": scale * jax.random.normal(ks[5], (1, 1), jnp.float32),
        # TODO(synk): self.time_agg is constructed in __init__ but never used in
        # forward(), so it is intentionally not instantiated here.
    }


# ------------------------- pure-JAX reference (check) ----------------------- #
def gin_app_reference(params, x_app_t, app_nb, x_loc_t, loc_nb, x_time_t):
    """Module semantics; emulates the kernel's bf16 input/weight casts so the
    comparison tolerance only has to cover accumulation order + approx recip."""
    q = lambda a: a.astype(jnp.bfloat16).astype(jnp.float32)
    x_app_t, app_nb = q(x_app_t), q(app_nb)
    x_loc_t, loc_nb = q(x_loc_t), q(loc_nb)
    x_time_t = q(x_time_t)
    w_app, w_loc, w_att = q(params["w_app"]), q(params["w_loc"]), q(params["w_att"])

    f_app = jax.nn.relu(
        jnp.concatenate([x_app_t, app_nb.sum(axis=1)], axis=-1) @ w_app + params["b_app"])
    f_loc = jax.nn.relu(
        jnp.concatenate([x_loc_t, loc_nb.sum(axis=1)], axis=-1) @ w_loc + params["b_loc"])

    def logit(f):
        comb = jnp.concatenate([x_app_t, f], axis=-1)            # (B, 3H)
        return comb @ w_att.T + params["b_att"]                  # (B, 1)

    logits = jnp.stack([logit(f_app), logit(f_loc), logit(x_time_t)], axis=0)  # (3, B, 1)
    scores = jax.nn.softmax(logits, axis=0)
    feats = jnp.stack([f_app, f_loc, x_time_t], axis=0)
    return jnp.sum(scores * feats, axis=0)


# --------------------------------- main ------------------------------------ #
if __name__ == "__main__":
    root = jax.random.PRNGKey(0)
    k_param, k_feat, k_graph, k_walk, k_tgt = jax.random.split(root, 5)

    params = init_params(k_param)

    # Small synthetic heterogeneous graph (deterministic).
    N = 16
    kf = jax.random.split(k_feat, 3)
    kg = jax.random.split(k_graph, 2)
    nodes = jnp.arange(N, dtype=jnp.int32)
    data = {
        "x_app": jax.random.normal(kf[0], (N, APP_DIM), jnp.float32),
        "x_loc": jax.random.normal(kf[1], (N, LOC_DIM), jnp.float32),
        "x_time": jax.random.normal(kf[2], (N, TIME_DIM), jnp.float32),
        # every node gets two outgoing edges so the walk never dead-ends
        "edge_index_app": jnp.stack([jnp.concatenate([nodes, nodes]),
                                     jnp.concatenate([(nodes + 1) % N, (nodes + 3) % N])]),
        "edge_weight_app": jax.random.uniform(kg[0], (2 * N,), jnp.float32, 0.5, 1.5),
        "edge_index_loc": jnp.stack([jnp.concatenate([nodes, nodes]),
                                     jnp.concatenate([(nodes + 2) % N, (nodes + 5) % N])]),
        "edge_weight_loc": jax.random.uniform(kg[1], (2 * N,), jnp.float32, 0.5, 1.5),
    }

    # Batched test: 80 target nodes.
    B = 80
    target_nodes = jax.random.randint(k_tgt, (B,), 0, N, dtype=jnp.int32)
    feats = gather_inputs(data, target_nodes, k_walk)
    ref = gin_app_reference(params, *feats)

    # Small tile to exercise a multi-step grid with batch padding (80 -> 2x64).
    out_small = jax.block_until_ready(gin_app_pallas(params, *feats, tile_b=64))
    assert out_small.shape == (B, HIDDEN)
    assert bool(jnp.all(jnp.isfinite(out_small)))
    err_small = float(jnp.max(jnp.abs(out_small - ref)))
    assert bool(jnp.allclose(out_small, ref, atol=5e-2, rtol=5e-2)), err_small

    # Default production tile (single padded grid step).
    out_big = jax.block_until_ready(gin_app_pallas(params, *feats))
    assert out_big.shape == (B, HIDDEN)
    err_big = float(jnp.max(jnp.abs(out_big - ref)))
    assert bool(jnp.allclose(out_big, ref, atol=5e-2, rtol=5e-2)), err_big

    print("KERNEL_OK")
</pallas_src>

<mosaic_0001>
module attributes {stable_mosaic.version = 11 : i64} {
  func.func @gin_app_kernel(%arg0: i32, %arg1: memref<64x448xbf16, #tpu.memory_space<vmem>>, %arg2: memref<64x112xbf16, #tpu.memory_space<vmem>>, %arg3: memref<64x32xbf16, #tpu.memory_space<vmem>>, %arg4: memref<448x32xbf16, #tpu.memory_space<vmem>>, %arg5: memref<1x32xf32, #tpu.memory_space<vmem>>, %arg6: memref<112x32xbf16, #tpu.memory_space<vmem>>, %arg7: memref<1x32xf32, #tpu.memory_space<vmem>>, %arg8: memref<448x1xbf16, #tpu.memory_space<vmem>>, %arg9: memref<32x1xf32, #tpu.memory_space<vmem>>, %arg10: memref<1x1xf32, #tpu.memory_space<smem>>, %arg11: memref<64x32xf32, #tpu.memory_space<vmem>>) attributes {dimension_semantics = [#tpu.dimension_semantics<parallel>], iteration_bounds = array<i64: 2>, scalar_prefetch = 0 : i64, scratch_operands = 0 : i64, tpu.core_type = #tpu.core_type<tc>, window_params = [{transform_indices = @transform_0, window_bounds = array<i64: 64, 448>}, {transform_indices = @transform_1, window_bounds = array<i64: 64, 112>}, {transform_indices = @transform_2, window_bounds = array<i64: 64, 32>}, {pipeline_mode = #tpu.pipeline_mode<synchronous>, transform_indices = @transform_3, window_bounds = array<i64: 448, 32>}, {pipeline_mode = #tpu.pipeline_mode<synchronous>, transform_indices = @transform_4, window_bounds = array<i64: 1, 32>}, {pipeline_mode = #tpu.pipeline_mode<synchronous>, transform_indices = @transform_5, window_bounds = array<i64: 112, 32>}, {pipeline_mode = #tpu.pipeline_mode<synchronous>, transform_indices = @transform_6, window_bounds = array<i64: 1, 32>}, {pipeline_mode = #tpu.pipeline_mode<synchronous>, transform_indices = @transform_7, window_bounds = array<i64: 448, 1>}, {pipeline_mode = #tpu.pipeline_mode<synchronous>, transform_indices = @transform_8, window_bounds = array<i64: 32, 1>}, {transform_indices = @transform_9, window_bounds = array<i64: 1, 1>}, {transform_indices = @transform_10, window_bounds = array<i64: 64, 32>}]} {
    %c0 = arith.constant 0 : index
    %c0_0 = arith.constant 0 : index
    %0 = vector.load %arg1[%c0, %c0_0] : memref<64x448xbf16, #tpu.memory_space<vmem>>, vector<64x448xbf16>
    %c0_1 = arith.constant 0 : index
    %c0_2 = arith.constant 0 : index
    %1 = vector.load %arg4[%c0_1, %c0_2] : memref<448x32xbf16, #tpu.memory_space<vmem>>, vector<448x32xbf16>
    %cst = arith.constant dense<0.000000e+00> : vector<64x32xf32>
    %2 = tpu.matmul %0, %1, %cst {dimension_numbers = #tpu.dot_dimension_numbers<[1], [0], [0], [1], [0, 0, 1, 1], [], []>} : vector<64x448xbf16>, vector<448x32xbf16>, vector<64x32xf32> -> vector<64x32xf32>
    %c0_3 = arith.constant 0 : index
    %c0_4 = arith.constant 0 : index
    %3 = vector.load %arg5[%c0_3, %c0_4] : memref<1x32xf32, #tpu.memory_space<vmem>>, vector<1x32xf32>
    %4 = vector.broadcast %3 : vector<1x32xf32> to vector<64x32xf32>
    %5 = arith.addf %2, %4 : vector<64x32xf32>
    %cst_5 = arith.constant 0.000000e+00 : f32
    %6 = vector.broadcast %cst_5 : f32 to vector<64x32xf32>
    %7 = arith.maximumf %5, %6 : vector<64x32xf32>
    %c0_6 = arith.constant 0 : index
    %c0_7 = arith.constant 0 : index
    %8 = vector.load %arg2[%c0_6, %c0_7] : memref<64x112xbf16, #tpu.memory_space<vmem>>, vector<64x112xbf16>
    %c0_8 = arith.constant 0 : index
    %c0_9 = arith.constant 0 : index
    %9 = vector.load %arg6[%c0_8, %c0_9] : memref<112x32xbf16, #tpu.memory_space<vmem>>, vector<112x32xbf16>
    %cst_10 = arith.constant dense<0.000000e+00> : vector<64x32xf32>
    %10 = tpu.matmul %8, %9, %cst_10 {dimension_numbers = #tpu.dot_dimension_numbers<[1], [0], [0], [1], [0, 0, 1, 1], [], []>} : vector<64x112xbf16>, vector<112x32xbf16>, vector<64x32xf32> -> vector<64x32xf32>
    %c0_11 = arith.constant 0 : index
    %c0_12 = arith.constant 0 : index
    %11 = vector.load %arg7[%c0_11, %c0_12] : memref<1x32xf32, #tpu.memory_space<vmem>>, vector<1x32xf32>
    %12 = vector.broadcast %11 : vector<1x32xf32> to vector<64x32xf32>
    %13 = arith.addf %10, %12 : vector<64x32xf32>
    %cst_13 = arith.constant 0.000000e+00 : f32
    %14 = vector.broadcast %cst_13 : f32 to vector<64x32xf32>
    %15 = arith.maximumf %13, %14 : vector<64x32xf32>
    %c0_14 = arith.constant 0 : index
    %c0_15 = arith.constant 0 : index
    %16 = vector.load %arg3[%c0_14, %c0_15] : memref<64x32xbf16, #tpu.memory_space<vmem>>, vector<64x32xbf16>
    %17 = arith.extf %16 : vector<64x32xbf16> to vector<64x32xf32>
    %c0_16 = arith.constant 0 : index
    %c0_17 = arith.constant 0 : index
    %18 = vector.load %arg8[%c0_16, %c0_17] : memref<448x1xbf16, #tpu.memory_space<vmem>>, vector<448x1xbf16>
    %cst_18 = arith.constant dense<0.000000e+00> : vector<64x1xf32>
    %19 = tpu.matmul %0, %18, %cst_18 {dimension_numbers = #tpu.dot_dimension_numbers<[1], [0], [0], [1], [0, 0, 1, 1], [], []>} : vector<64x448xbf16>, vector<448x1xbf16>, vector<64x1xf32> -> vector<64x1xf32>
    %c0_19 = arith.constant 0 : index
    %c0_20 = arith.constant 0 : index
    %20 = memref.load %arg10[%c0_19, %c0_20] : memref<1x1xf32, #tpu.memory_space<smem>>
    %21 = vector.broadcast %20 : f32 to vector<64x1xf32>
    %22 = arith.addf %19, %21 : vector<64x1xf32>
    %c0_21 = arith.constant 0 : index
    %c0_22 = arith.constant 0 : index
    %23 = vector.load %arg9[%c0_21, %c0_22] : memref<32x1xf32, #tpu.memory_space<vmem>>, vector<32x1xf32>
    %cst_23 = arith.constant dense<0.000000e+00> : vector<64x1xf32>
    %24 = tpu.matmul %7, %23, %cst_23 {dimension_numbers = #tpu.dot_dimension_numbers<[1], [0], [0], [1], [0, 0, 1, 1], [], []>} : vector<64x32xf32>, vector<32x1xf32>, vector<64x1xf32> -> vector<64x1xf32>
    %25 = arith.addf %24, %22 : vector<64x1xf32>
    %c0_24 = arith.constant 0 : index
    %c0_25 = arith.constant 0 : index
    %26 = vector.load %arg9[%c0_24, %c0_25] : memref<32x1xf32, #tpu.memory_space<vmem>>, vector<32x1xf32>
    %cst_26 = arith.constant dense<0.000000e+00> : vector<64x1xf32>
    %27 = tpu.matmul %15, %26, %cst_26 {dimension_numbers = #tpu.dot_dimension_numbers<[1], [0], [0], [1], [0, 0, 1, 1], [], []>} : vector<64x32xf32>, vector<32x1xf32>, vector<64x1xf32> -> vector<64x1xf32>
    %28 = arith.addf %27, %22 : vector<64x1xf32>
    %c0_27 = arith.constant 0 : index
    %c0_28 = arith.constant 0 : index
    %29 = vector.load %arg9[%c0_27, %c0_28] : memref<32x1xf32, #tpu.memory_space<vmem>>, vector<32x1xf32>
    %cst_29 = arith.constant dense<0.000000e+00> : vector<64x1xf32>
    %30 = tpu.matmul %17, %29, %cst_29 {dimension_numbers = #tpu.dot_dimension_numbers<[1], [0], [0], [1], [0, 0, 1, 1], [], []>} : vector<64x32xf32>, vector<32x1xf32>, vector<64x1xf32> -> vector<64x1xf32>
    %31 = arith.addf %30, %22 : vector<64x1xf32>
    %32 = arith.maximumf %25, %28 : vector<64x1xf32>
    %33 = arith.maximumf %32, %31 : vector<64x1xf32>
    %34 = arith.subf %25, %33 : vector<64x1xf32>
    %35 = math.exp %34 : vector<64x1xf32>
    %36 = arith.subf %28, %33 : vector<64x1xf32>
    %37 = math.exp %36 : vector<64x1xf32>
    %38 = arith.subf %31, %33 : vector<64x1xf32>
    %39 = math.exp %38 : vector<64x1xf32>
    %40 = arith.addf %35, %37 : vector<64x1xf32>
    %41 = arith.addf %40, %39 : vector<64x1xf32>
    %42 = tpu.reciprocal %41 {approx = true} : vector<64x1xf32> -> vector<64x1xf32>
    %43 = arith.mulf %35, %42 : vector<64x1xf32>
    %44 = vector.broadcast %43 : vector<64x1xf32> to vector<64x32xf32>
    %45 = arith.mulf %44, %7 : vector<64x32xf32>
    %46 = arith.mulf %37, %42 : vector<64x1xf32>
    %47 = vector.broadcast %46 : vector<64x1xf32> to vector<64x32xf32>
    %48 = arith.mulf %47, %15 : vector<64x32xf32>
    %49 = arith.addf %45, %48 : vector<64x32xf32>
    %50 = arith.mulf %39, %42 : vector<64x1xf32>
    %51 = vector.broadcast %50 : vector<64x1xf32> to vector<64x32xf32>
    %52 = arith.mulf %51, %17 : vector<64x32xf32>
    %53 = arith.addf %49, %52 : vector<64x32xf32>
    %c0_30 = arith.constant 0 : index
    %c0_31 = arith.constant 0 : index
    %54 = vector.load %arg11[%c0_30, %c0_31] : memref<64x32xf32, #tpu.memory_space<vmem>>, vector<64x32xf32>
    tpu.vector_store %arg11[%c0_30, %c0_31], %53 {strides = array<i32>} : memref<64x32xf32, #tpu.memory_space<vmem>>, vector<64x32xf32>,
    return
  }
  func.func @transform_0(%arg0: i32) -> (i32, i32) {
    %c0_i32 = arith.constant 0 : i32
    %c0_i32_0 = arith.constant 0 : i32
    return %arg0, %c0_i32 : i32, i32
  }
  func.func @transform_1(%arg0: i32) -> (i32, i32) {
    %c0_i32 = arith.constant 0 : i32
    %c0_i32_0 = arith.constant 0 : i32
    return %arg0, %c0_i32 : i32, i32
  }
  func.func @transform_2(%arg0: i32) -> (i32, i32) {
    %c0_i32 = arith.constant 0 : i32
    %c0_i32_0 = arith.constant 0 : i32
    return %arg0, %c0_i32 : i32, i32
  }
  func.func @transform_3(%arg0: i32) -> (i32, i32) {
    %c0_i32 = arith.constant 0 : i32
    %c0_i32_0 = arith.constant 0 : i32
    %c0_i32_1 = arith.constant 0 : i32
    return %c0_i32, %c0_i32_0 : i32, i32
  }
  func.func @transform_4(%arg0: i32) -> (i32, i32) {
    %c0_i32 = arith.constant 0 : i32
    %c0_i32_0 = arith.constant 0 : i32
    %c0_i32_1 = arith.constant 0 : i32
    return %c0_i32, %c0_i32_0 : i32, i32
  }
  func.func @transform_5(%arg0: i32) -> (i32, i32) {
    %c0_i32 = arith.constant 0 : i32
    %c0_i32_0 = arith.constant 0 : i32
    %c0_i32_1 = arith.constant 0 : i32
    return %c0_i32, %c0_i32_0 : i32, i32
  }
  func.func @transform_6(%arg0: i32) -> (i32, i32) {
    %c0_i32 = arith.constant 0 : i32
    %c0_i32_0 = arith.constant 0 : i32
    %c0_i32_1 = arith.constant 0 : i32
    return %c0_i32, %c0_i32_0 : i32, i32
  }
  func.func @transform_7(%arg0: i32) -> (i32, i32) {
    %c0_i32 = arith.constant 0 : i32
    %c0_i32_0 = arith.constant 0 : i32
    %c0_i32_1 = arith.constant 0 : i32
    return %c0_i32, %c0_i32_0 : i32, i32
  }
  func.func @transform_8(%arg0: i32) -> (i32, i32) {
    %c0_i32 = arith.constant 0 : i32
    %c0_i32_0 = arith.constant 0 : i32
    %c0_i32_1 = arith.constant 0 : i32
    return %c0_i32, %c0_i32_0 : i32, i32
  }
  func.func @transform_9(%arg0: i32) -> (i32, i32) {
    %c0_i32 = arith.constant 0 : i32
    %c0_i32_0 = arith.constant 0 : i32
    %c0_i32_1 = arith.constant 0 : i32
    return %c0_i32, %c0_i32_0 : i32, i32
  }
  func.func @transform_10(%arg0: i32) -> (i32, i32) {
    %c0_i32 = arith.constant 0 : i32
    %c0_i32_0 = arith.constant 0 : i32
    return %arg0, %c0_i32 : i32, i32
  }
}

</mosaic_0001>

<bundles_post_ra>
// kernel: tile.1
= control target key start
LH: loop header
LB: loop body
LE: loop exit
PB: predicated region body
PF: predicated region fallthrough
CT: control target
= control target key end

     0   :  { %vm515_vm0 = vcmask 523264   ;;  %vm676_vm1 = vcmask 1047556   ;;  %vm680_vm2 = vcmask 1048064   ;;  %s1266_s0 = inlined_call_operand.vmem [shape: bf16[6,64,32], index: 0, kind: input, shape index: {}]   ;;  %s1267_s1 = inlined_call_operand.vmem [shape: bf16[384,32], index: 1, kind: output, shape index: {}]  }
   0x1   :  { %v1084_v0 = vld [vmem:[%s1266_s0 + $0x38] sm:$0xff]   ;;  %v1085_v1 = vld [vmem:[%s1266_s0 + $0x30] sm:$0xff]   ;;  %v1086_v2 = vld [vmem:[%s1266_s0 + $0x28] sm:$0xff]  }
   0x2   :  { %v1016_v3 = vunpack.c.l.bf16 %v1084_v0  ;;  %v1017_v4 = vunpack.c.h.bf16 %v1084_v0  ;;  %v1020_v5 = vunpack.c.l.bf16 %v1085_v1  ;;  %v1021_v6 = vunpack.c.h.bf16 %v1085_v1  ;;  %v1087_v7 = vld [vmem:[%s1266_s0 + $0x20] sm:$0xff]   ;;  %v1088_v8 = vld [vmem:[%s1266_s0 + $0x18] sm:$0xff]   ;;  %v1089_v9 = vld [vmem:[%s1266_s0 + $0x10] sm:$0xff]  }
   0x3   :  { %v1024_v10 = vunpack.c.l.bf16 %v1086_v2  ;;  %v1025_v11 = vunpack.c.h.bf16 %v1086_v2  ;;  %v1028_v12 = vunpack.c.l.bf16 %v1087_v7  ;;  %v1029_v13 = vunpack.c.h.bf16 %v1087_v7  ;;  %v1090_v14 = vld [vmem:[%s1266_s0 + $0x8] sm:$0xff]   ;;  %v1043_v15 = vld [vmem:[%s1266_s0] sm:$0xff]   ;;  %v1076_v16 = vld [vmem:[%s1266_s0 + $0x78] sm:$0xff]  }
   0x4   :  { %277 = vst [vmem:[#allocation1 + $0x78] sm:$0xff] %v1017_v4  ;;  %293 = vst [vmem:[#allocation1 + $0x70] sm:$0xff] %v1016_v3  ;;  %v1032_v17 = vunpack.c.l.bf16 %v1088_v8  ;;  %v1033_v18 = vunpack.c.h.bf16 %v1088_v8  ;;  %v1036_v19 = vunpack.c.l.bf16 %v1089_v9  ;;  %v1037_v20 = vunpack.c.h.bf16 %v1089_v9  ;;  %v1077_v21 = vld [vmem:[%s1266_s0 + $0x70] sm:$0xff]   ;;  %v1078_v22 = vld [vmem:[%s1266_s0 + $0x68] sm:$0xff]  }
   0x5   :  { %309 = vst [vmem:[#allocation1 + $0x68] sm:$0xff] %v1021_v6  ;;  %325 = vst [vmem:[#allocation1 + $0x60] sm:$0xff] %v1020_v5  ;;  %v1079_v23 = vld [vmem:[%s1266_s0 + $0x60] sm:$0xff]   ;;  %v1040_v24 = vunpack.c.l.bf16 %v1090_v14  ;;  %v1041_v25 = vunpack.c.h.bf16 %v1090_v14  ;;  %v1044_v26 = vunpack.c.l.bf16 %v1043_v15  ;;  %v1045_v27 = vunpack.c.h.bf16 %v1043_v15  ;;  %v1080_v28 = vld [vmem:[%s1266_s0 + $0x58] sm:$0xff]  }
   0x6   :  { %341 = vst [vmem:[#allocation1 + $0x58] sm:$0xff] %v1025_v11  ;;  %357 = vst [vmem:[#allocation1 + $0x50] sm:$0xff] %v1024_v10  ;;  %v1081_v29 = vld [vmem:[%s1266_s0 + $0x50] sm:$0xff]   ;;  %v984_v30 = vunpack.c.l.bf16 %v1076_v16  ;;  %v985_v31 = vunpack.c.h.bf16 %v1076_v16  ;;  %v988_v32 = vunpack.c.l.bf16 %v1077_v21  ;;  %v989_v33 = vunpack.c.h.bf16 %v1077_v21  ;;  %v1082_v34 = vld [vmem:[%s1266_s0 + $0x48] sm:$0xff]  }
   0x7   :  { %373 = vst [vmem:[#allocation1 + $0x48] sm:$0xff] %v1029_v13  ;;  %389 = vst [vmem:[#allocation1 + $0x40] sm:$0xff] %v1028_v12  ;;  %v1083_v35 = vld [vmem:[%s1266_s0 + $0x40] sm:$0xff]   ;;  %v992_v36 = vunpack.c.l.bf16 %v1078_v22  ;;  %v993_v37 = vunpack.c.h.bf16 %v1078_v22  ;;  %v996_v38 = vunpack.c.l.bf16 %v1079_v23  ;;  %v997_v39 = vunpack.c.h.bf16 %v1079_v23  ;;  %s1127_s0 = smov 64  }
   0x8   :  { %405 = vst [vmem:[#allocation1 + $0x38] sm:$0xff] %v1033_v18  ;;  %421 = vst [vmem:[#allocation1 + $0x30] sm:$0xff] %v1032_v17  ;;  %v1000_v40 = vunpack.c.l.bf16 %v1080_v28  ;;  %v1001_v41 = vunpack.c.h.bf16 %v1080_v28  ;;  %v1004_v42 = vunpack.c.l.bf16 %v1081_v29  ;;  %v1005_v43 = vunpack.c.h.bf16 %v1081_v29 }
   0x9   :  { %437 = vst [vmem:[#allocation1 + $0x28] sm:$0xff] %v1037_v20  ;;  %453 = vst [vmem:[#allocation1 + $0x20] sm:$0xff] %v1036_v19  ;;  %v1008_v44 = vunpack.c.l.bf16 %v1082_v34  ;;  %v1009_v45 = vunpack.c.h.bf16 %v1082_v34  ;;  %v1012_v46 = vunpack.c.l.bf16 %v1083_v35  ;;  %v1013_v47 = vunpack.c.h.bf16 %v1083_v35 }
   0xa   :  { %469 = vst [vmem:[#allocation1 + $0x18] sm:$0xff] %v1041_v25  ;;  %485 = vst [vmem:[#allocation1 + $0x10] sm:$0xff] %v1040_v24 }
   0xb   :  { %500 = vst [vmem:[#allocation1 + $0x8] sm:$0xff] %v1045_v27  ;;  %513 = vst [vmem:[#allocation1] sm:$0xff] %v1044_v26  ;;  %v583_v5 = vld [vmem:[#allocation1 + $0x70] ss:$2 sm:$0x7]  }
   0xc   :  { %21 = vst [vmem:[#allocation1 + $0xf8] sm:$0xff] %v985_v31  ;;  %37 = vst [vmem:[#allocation1 + $0xf0] sm:$0xff] %v984_v30  ;;  %v685_v48 = vld [vmem:[#allocation1 + $0x43] ss:$8 sm:$0xf0]  }
   0xd   :  { %53 = vst [vmem:[#allocation1 + $0xe8] sm:$0xff] %v989_v33  ;;  %69 = vst [vmem:[#allocation1 + $0xe0] sm:$0xff] %v988_v32  ;;  %v573_v49 = vld [vmem:[#allocation1 + $0x60] ss:$2 sm:$0x7]  }
   0xe   :  { %85 = vst [vmem:[#allocation1 + $0xd8] sm:$0xff] %v993_v37  ;;  %101 = vst [vmem:[#allocation1 + $0xd0] sm:$0xff] %v992_v36  ;;  %v683_v50 = vld [vmem:[#allocation1 + $0x43] ss:$8 sm:$0xf]  }
   0xf   :  { %117 = vst [vmem:[#allocation1 + $0xc8] sm:$0xff] %v997_v39  ;;  %133 = vst [vmem:[#allocation1 + $0xc0] sm:$0xff] %v996_v38  ;;  %v553_v51 = vld [vmem:[#allocation1 + $0x40] ss:$2 sm:$0x7]   ;;  %v687_v60 = vsel %vm676_vm1, %v685_v48, %v683_v50 }
  0x10   :  { %149 = vst [vmem:[#allocation1 + $0xb8] sm:$0xff] %v1001_v41  ;;  %165 = vst [vmem:[#allocation1 + $0xb0] sm:$0xff] %v1000_v40  ;;  %v533_v52 = vld [vmem:[#allocation1 + $0x20] ss:$2 sm:$0x7]  }
  0x11   :  { %181 = vst [vmem:[#allocation1 + $0xa8] sm:$0xff] %v1005_v43  ;;  %197 = vst [vmem:[#allocation1 + $0xa0] sm:$0xff] %v1004_v42  ;;  %v538_v53 = vld [vmem:[#allocation1 + $0x28] ss:$2 sm:$0x7]  }
  0x12   :  { %213 = vst [vmem:[#allocation1 + $0x98] sm:$0xff] %v1009_v45  ;;  %229 = vst [vmem:[#allocation1 + $0x90] sm:$0xff] %v1008_v44  ;;  %v514_v54 = vld [vmem:[#allocation1] ss:$2 sm:$0x7]  }
  0x13   :  { %245 = vst [vmem:[#allocation1 + $0x88] sm:$0xff] %v1013_v47  ;;  %261 = vst [vmem:[#allocation1 + $0x80] sm:$0xff] %v1012_v46  ;;  %v518_v55 = vld [vmem:[#allocation1 + $0x8] ss:$2 sm:$0x7]  }
  0x14   :  { %576 = vst.msk [vmem:[#allocation0 + $0x1c] ss:$8 sm:$0x7] %vm515_vm0, %v573_v49   ;;  %556 = vst.msk [vmem:[#allocation0 + $0x18] ss:$8 sm:$0x7] %vm515_vm0, %v553_v51  }
  0x15   :  { %536 = vst.msk [vmem:[#allocation0 + $0x4] ss:$8 sm:$0x7] %vm515_vm0, %v533_v52   ;;  %541 = vst.msk [vmem:[#allocation0 + $0x5] ss:$8 sm:$0x7] %vm515_vm0, %v538_v53  }
  0x16   :  { %516 = vst.msk [vmem:[#allocation0] ss:$8 sm:$0x7] %vm515_vm0, %v514_v54   ;;  %521 = vst.msk [vmem:[#allocation0 + $0x1] ss:$8 sm:$0x7] %vm515_vm0, %v518_v55  }
  0x17   :  { %v523_v56 = vld [vmem:[#allocation1 + $0x10] ss:$2 sm:$0x7]   ;;  %v528_v57 = vld [vmem:[#allocation1 + $0x18] ss:$2 sm:$0x7]  }
  0x18   :  { %526 = vst.msk [vmem:[#allocation0 + $0x2] ss:$8 sm:$0x7] %vm515_vm0, %v523_v56   ;;  %531 = vst.msk [vmem:[#allocation0 + $0x3] ss:$8 sm:$0x7] %vm515_vm0, %v528_v57  }
  0x19   :  { %v543_v58 = vld [vmem:[#allocation1 + $0x30] ss:$2 sm:$0x7]   ;;  %v548_v59 = vld [vmem:[#allocation1 + $0x38] ss:$2 sm:$0x7]  }
  0x1a   :  { %546 = vst.msk [vmem:[#allocation0 + $0x6] ss:$8 sm:$0x7] %vm515_vm0, %v543_v58   ;;  %551 = vst.msk [vmem:[#allocation0 + $0x7] ss:$8 sm:$0x7] %vm515_vm0, %v548_v59  }
  0x1b   :  { %v673_v61 = vld [vmem:[#allocation1 + $0x1] ss:$8 sm:$0xf]   ;;  %v558_v0 = vld [vmem:[#allocation1 + $0x48] ss:$2 sm:$0x7]  }
  0x1c   :  { %v675_v62 = vld [vmem:[#allocation1 + $0x1] ss:$8 sm:$0xf0]   ;;  %v563_v1 = vld [vmem:[#allocation1 + $0x50] ss:$2 sm:$0x7]  }
  0x1d   :  { %v677_v63 = vsel %vm676_vm1, %v675_v62, %v673_v61  ;;  %561 = vst.msk [vmem:[#allocation0 + $0x19] ss:$8 sm:$0x7] %vm515_vm0, %v558_v0   ;;  %566 = vst.msk [vmem:[#allocation0 + $0x1a] ss:$8 sm:$0x7] %vm515_vm0, %v563_v1  }
  0x1e   :  { %v1097_v2 = vpack.i.bf16 %v687_v60, %v677_v63  ;;  %v568_v3 = vld [vmem:[#allocation1 + $0x58] ss:$2 sm:$0x7]   ;;  %v578_v4 = vld [vmem:[#allocation1 + $0x68] ss:$2 sm:$0x7]  }
  0x1f   :  { %571 = vst.msk [vmem:[#allocation0 + $0x1b] ss:$8 sm:$0x7] %vm515_vm0, %v568_v3   ;;  %581 = vst.msk [vmem:[#allocation0 + $0x1d] ss:$8 sm:$0x7] %vm515_vm0, %v578_v4  }
  0x20   :  { %v588_v6 = vld [vmem:[#allocation1 + $0x78] ss:$2 sm:$0x7]   ;;  %1098 = vrot.lane.b32.xlu0 %v1097_v2, %s1127_s0  ;;  %586 = vst.msk [vmem:[#allocation0 + $0x1e] ss:$8 sm:$0x7] %vm515_vm0, %v583_v5  }
  0x21   :  { %591 = vst.msk [vmem:[#allocation0 + $0x1f] ss:$8 sm:$0x7] %vm515_vm0, %v588_v6   ;;  %v633_v7 = vld [vmem:[#allocation1 + $0xc0] ss:$2 sm:$0x7]  }
  0x22   :  { %v638_v8 = vld [vmem:[#allocation1 + $0xc8] ss:$2 sm:$0x7]   ;;  %636 = vst.msk [vmem:[#allocation0 + $0x48] ss:$8 sm:$0x7] %vm515_vm0, %v633_v7  }
  0x23   :  { %641 = vst.msk [vmem:[#allocation0 + $0x49] ss:$8 sm:$0x7] %vm515_vm0, %v638_v8   ;;  %v643_v9 = vld [vmem:[#allocation1 + $0xd0] ss:$2 sm:$0x7]  }
  0x24   :  { %v648_v10 = vld [vmem:[#allocation1 + $0xd8] ss:$2 sm:$0x7]   ;;  %646 = vst.msk [vmem:[#allocation0 + $0x4a] ss:$8 sm:$0x7] %vm515_vm0, %v643_v9  }
  0x25   :  { %651 = vst.msk [vmem:[#allocation0 + $0x4b] ss:$8 sm:$0x7] %vm515_vm0, %v648_v10   ;;  %v653_v11 = vld [vmem:[#allocation1 + $0xe0] ss:$2 sm:$0x7]  }
  0x26   :  { %v658_v12 = vld [vmem:[#allocation1 + $0xe8] ss:$2 sm:$0x7]   ;;  %656 = vst.msk [vmem:[#allocation0 + $0x4c] ss:$8 sm:$0x7] %vm515_vm0, %v653_v11  }
  0x27   :  { %661 = vst.msk [vmem:[#allocation0 + $0x4d] ss:$8 sm:$0x7] %vm515_vm0, %v658_v12   ;;  %v668_v13 = vld [vmem:[#allocation1 + $0xf8] ss:$2 sm:$0x7]  }
  0x28   :  { %v716_v14 = vld [vmem:[#allocation1 + $0x45] ss:$8 sm:$0xf]   ;;  %671 = vst.msk [vmem:[#allocation0 + $0x4f] ss:$8 sm:$0x7] %vm515_vm0, %v668_v13  }
  0x29   :  { %v718_v15 = vld [vmem:[#allocation1 + $0x45] ss:$8 sm:$0xf0]   ;;  %v727_v16 = vld [vmem:[#allocation1 + $0xc1] ss:$8 sm:$0xf]  }
  0x2a   :  { %v720_v17 = vsel %vm676_vm1, %v718_v15, %v716_v14  ;;  %v729_v18 = vld [vmem:[#allocation1 + $0xc1] ss:$8 sm:$0xf0]   ;;  %v663_v19 = vld [vmem:[#allocation1 + $0xf0] ss:$2 sm:$0x7]  }
  0x2b   :  { %v731_v20 = vsel %vm676_vm1, %v729_v18, %v727_v16  ;;  %666 = vst.msk [vmem:[#allocation0 + $0x4e] ss:$8 sm:$0x7] %vm515_vm0, %v663_v19   ;;  %v694_v21 = vld [vmem:[#allocation1 + $0x85] ss:$8 sm:$0xf]  }
  0x2c   :  { %v696_v22 = vld [vmem:[#allocation1 + $0x85] ss:$8 sm:$0xf0]   ;;  %v1107_v23 = vpack.i.bf16 %v731_v20, %v720_v17  ;;  %v705_v25 = vld [vmem:[#allocation1 + $0x3] ss:$8 sm:$0xf]  }
  0x2d   :  { %v698_v24 = vsel %vm676_vm1, %v696_v22, %v694_v21  ;;  %v707_v26 = vld [vmem:[#allocation1 + $0x3] ss:$8 sm:$0xf0]   ;;  %v593_v28 = vld [vmem:[#allocation1 + $0x80] ss:$2 sm:$0x7]  }
  0x2e   :  { %v709_v27 = vsel %vm676_vm1, %v707_v26, %v705_v25  ;;  %v598_v29 = vld [vmem:[#allocation1 + $0x88] ss:$2 sm:$0x7]   ;;  %1108 = vrot.lane.b32.xlu1 %v1107_v23, %s1127_s0  ;;  %596 = vst.msk [vmem:[#allocation0 + $0x30] ss:$8 sm:$0x7] %vm515_vm0, %v593_v28  }
  0x2f   :  { %v1102_v30 = vpack.i.bf16 %v709_v27, %v698_v24  ;;  %601 = vst.msk [vmem:[#allocation0 + $0x31] ss:$8 sm:$0x7] %vm515_vm0, %v598_v29   ;;  %v603_v31 = vld [vmem:[#allocation1 + $0x90] ss:$2 sm:$0x7]  }
  0x30   :  { %v608_v32 = vld [vmem:[#allocation1 + $0x98] ss:$2 sm:$0x7]   ;;  %606 = vst.msk [vmem:[#allocation0 + $0x32] ss:$8 sm:$0x7] %vm515_vm0, %v603_v31  }
  0x31   :  { %611 = vst.msk [vmem:[#allocation0 + $0x33] ss:$8 sm:$0x7] %vm515_vm0, %v608_v32   ;;  %v738_v33 = vld [vmem:[#allocation1 + $0x5] ss:$8 sm:$0xf]   ;;  %1103 = vrot.lane.b32.xlu0 %v1102_v30, %s1127_s0 }
  0x32   :  { %v740_v34 = vld [vmem:[#allocation1 + $0x5] ss:$8 sm:$0xf0]   ;;  %v749_v36 = vld [vmem:[#allocation1 + $0x81] ss:$8 sm:$0xf]  }
  0x33   :  { %v742_v35 = vsel %vm676_vm1, %v740_v34, %v738_v33  ;;  %v751_v37 = vld [vmem:[#allocation1 + $0x81] ss:$8 sm:$0xf0]   ;;  %v760_v39 = vld [vmem:[#allocation1 + $0xc3] ss:$8 sm:$0xf]  }
  0x34   :  { %v753_v38 = vsel %vm676_vm1, %v751_v37, %v749_v36  ;;  %v762_v40 = vld [vmem:[#allocation1 + $0xc3] ss:$8 sm:$0xf0]   ;;  %v771_v43 = vld [vmem:[#allocation1 + $0x41] ss:$8 sm:$0xf]  }
  0x35   :  { %v1112_v41 = vpack.i.bf16 %v753_v38, %v742_v35  ;;  %v764_v42 = vsel %vm676_vm1, %v762_v40, %v760_v39  ;;  %v773_v44 = vld [vmem:[#allocation1 + $0x41] ss:$8 sm:$0xf0]   ;;  %v613_v46 = vld [vmem:[#allocation1 + $0xa0] ss:$2 sm:$0x7]  }
  0x36   :  { %v775_v45 = vsel %vm676_vm1, %v773_v44, %v771_v43  ;;  %v618_v47 = vld [vmem:[#allocation1 + $0xa8] ss:$2 sm:$0x7]   ;;  %616 = vst.msk [vmem:[#allocation0 + $0x34] ss:$8 sm:$0x7] %vm515_vm0, %v613_v46  }
  0x37   :  { %1113 = vrot.lane.b32.xlu1 %v1112_v41, %s1127_s0  ;;  %v1117_v48 = vpack.i.bf16 %v775_v45, %v764_v42  ;;  %621 = vst.msk [vmem:[#allocation0 + $0x35] ss:$8 sm:$0x7] %vm515_vm0, %v618_v47   ;;  %v623_v49 = vld [vmem:[#allocation1 + $0xb0] ss:$2 sm:$0x7]  }
  0x38   :  { %v628_v50 = vld [vmem:[#allocation1 + $0xb8] ss:$2 sm:$0x7]   ;;  %626 = vst.msk [vmem:[#allocation0 + $0x36] ss:$8 sm:$0x7] %vm515_vm0, %v623_v49  }
  0x39   :  { %631 = vst.msk [vmem:[#allocation0 + $0x37] ss:$8 sm:$0x7] %vm515_vm0, %v628_v50   ;;  %v782_v51 = vld [vmem:[#allocation1 + $0x83] ss:$8 sm:$0xf]   ;;  %1118 = vrot.lane.b32.xlu0 %v1117_v48, %s1127_s0 }
  0x3a   :  { %v784_v52 = vld [vmem:[#allocation1 + $0x83] ss:$8 sm:$0xf0]   ;;  %v793_v54 = vld [vmem:[#allocation1 + $0xc5] ss:$8 sm:$0xf]  }
  0x3b   :  { %v786_v53 = vsel %vm676_vm1, %v784_v52, %v782_v51  ;;  %v795_v55 = vld [vmem:[#allocation1 + $0xc5] ss:$8 sm:$0xf0]  }
  0x3c   :  { %v797_v56 = vsel %vm676_vm1, %v795_v55, %v793_v54 }
  0x3d   :  { %v1122_v57 = vpack.i.bf16 %v797_v56, %v786_v53 }
  0x3f   :  { %1123 = vrot.lane.b32.xlu1 %v1122_v57, %s1127_s0 }
  0x92   :  { %v1099_v58 = vpop.permute.xlu0 %1098 }
  0x93   :  { %v1101_v59 = vunpack.i.h.bf16 %v1099_v58  ;;  %v1100_v60 = vunpack.i.l.bf16 %v1099_v58 }
  0x95   :  { %681 = vst.msk [vmem:[#allocation0] sm:$0xff] %vm680_vm2, %v1100_v60   ;;  %692 = vst.msk [vmem:[#allocation0 + $0x20] sm:$0xff] %vm680_vm2, %v1101_v59  }
  0x9c   :  { %v837_v6 = vld [vmem:[#allocation0 + $0x20] sm:$0xff] }
  0x9d   :  { %v808_v11 = vld [vmem:[#allocation0] sm:$0xff] }
  0xa0   :  { %v1109_v61 = vpop.permute.xlu1 %1108 }
  0xa1   :  { %v1111_v62 = vunpack.i.h.bf16 %v1109_v61  ;;  %v1110_v63 = vunpack.i.l.bf16 %v1109_v61 }
  0xa3   :  { %v1104_v0 = vpop.permute.xlu0 %1103  ;;  %725 = vst.msk [vmem:[#allocation0 + $0x28] sm:$0xff] %vm680_vm2, %v1110_v63   ;;  %736 = vst.msk [vmem:[#allocation0 + $0x48] sm:$0xff] %vm680_vm2, %v1111_v62  }
  0xa4   :  { %v1106_v1 = vunpack.i.h.bf16 %v1104_v0  ;;  %v1105_v2 = vunpack.i.l.bf16 %v1104_v0 }
  0xa6   :  { %714 = vst.msk [vmem:[#allocation0 + $0x8] sm:$0xff] %vm680_vm2, %v1106_v1   ;;  %703 = vst.msk [vmem:[#allocation0 + $0x40] sm:$0xff] %vm680_vm2, %v1105_v2  }
  0xa9   :  { %v1114_v3 = vpop.permute.xlu1 %1113 }
  0xaa   :  { %v1116_v4 = vunpack.i.h.bf16 %v1114_v3  ;;  %v1115_v5 = vunpack.i.l.bf16 %v1114_v3  ;;  %v845_v10 = vld [vmem:[#allocation0 + $0x28] sm:$0xff] }
  0xab   :  { %v1119_v7 = vpop.permute.xlu0 %1118  ;;  %v1059_v12 = vpack.c.bf16 %v845_v10, %v837_v6  ;;  %v877_v13 = vld [vmem:[#allocation0 + $0x48] sm:$0xff] }
  0xac   :  { %758 = vst.msk [vmem:[#allocation0 + $0x30] sm:$0xff] %vm680_vm2, %v1116_v4   ;;  %747 = vst.msk [vmem:[#allocation0 + $0x10] sm:$0xff] %vm680_vm2, %v1115_v5   ;;  %v1121_v8 = vunpack.i.h.bf16 %v1119_v7  ;;  %v1120_v9 = vunpack.i.l.bf16 %v1119_v7 }
  0xad   :  { %v814_v14 = vld [vmem:[#allocation0 + $0x8] sm:$0xff]  ;;  %v869_v15 = vld [vmem:[#allocation0 + $0x40] sm:$0xff]  ;;  %1092 = vst [vmem:[%s1267_s1 + $0x10] sm:$0xff] %v1059_v12  }
  0xae   :  { %780 = vst.msk [vmem:[#allocation0 + $0x18] sm:$0xff] %vm680_vm2, %v1121_v8   ;;  %769 = vst.msk [vmem:[#allocation0 + $0x50] sm:$0xff] %vm680_vm2, %v1120_v9   ;;  %v1049_v17 = vpack.c.bf16 %v814_v14, %v808_v11  ;;  %v1069_v18 = vpack.c.bf16 %v877_v13, %v869_v15 }
  0xb0   :  { %1050 = vst [vmem:[%s1267_s1] sm:$0xff] %v1049_v17   ;;  %1094 = vst [vmem:[%s1267_s1 + $0x20] sm:$0xff] %v1069_v18  }
  0xb1   :  { %v1124_v16 = vpop.permute.xlu1 %1123 }
  0xb2   :  { %v1126_v19 = vunpack.i.h.bf16 %v1124_v16  ;;  %v1125_v20 = vunpack.i.l.bf16 %v1124_v16 }
  0xb3   :  { %v821_v21 = vld [vmem:[#allocation0 + $0x10] sm:$0xff] }
  0xb4   :  { %791 = vst.msk [vmem:[#allocation0 + $0x38] sm:$0xff] %vm680_vm2, %v1125_v20   ;;  %802 = vst.msk [vmem:[#allocation0 + $0x58] sm:$0xff] %vm680_vm2, %v1126_v19   ;;  %v853_v25 = vld [vmem:[#allocation0 + $0x30] sm:$0xff] }
  0xb5   :  { %v829_v22 = vld [vmem:[#allocation0 + $0x18] sm:$0xff]  ;;  %v885_v24 = vld [vmem:[#allocation0 + $0x50] sm:$0xff] }
  0xb6   :  { %v1054_v23 = vpack.c.bf16 %v829_v22, %v821_v21 }
  0xb8   :  { %1091 = vst [vmem:[%s1267_s1 + $0x8] sm:$0xff] %v1054_v23  }
  0xbb   :  { %v861_v26 = vld [vmem:[#allocation0 + $0x38] sm:$0xff] }
  0xbc   :  { %v893_v27 = vld [vmem:[#allocation0 + $0x58] sm:$0xff]  ;;  %v1064_v28 = vpack.c.bf16 %v861_v26, %v853_v25 }
  0xbd   :  { %v1074_v29 = vpack.c.bf16 %v893_v27, %v885_v24 }
  0xbe   :  { %1093 = vst [vmem:[%s1267_s1 + $0x18] sm:$0xff] %v1064_v28  }
  0xbf   :  { %1095 = vst [vmem:[%s1267_s1 + $0x28] sm:$0xff] %v1074_v29  }

// kernel: gin_app_pallas.1
= control target key start
LH: loop header
LB: loop body
LE: loop exit
PB: predicated region body
PF: predicated region fallthrough
CT: control target
= control target key end

     0   :  { %s2818_s15 = smov 0   ;;  %s3517_s0 = inlined_call_operand.vmem [shape: bf16[128,448], index: 0, kind: input, shape index: {}]   ;;  %s3518_s1 = inlined_call_operand.vmem [shape: bf16[128,112], index: 1, kind: input, shape index: {}]   ;;  %s3519_s2 = inlined_call_operand.vmem [shape: bf16[128,32], index: 2, kind: input, shape index: {}]   ;;  %s3520_s3 = inlined_call_operand.vmem [shape: bf16[448,32], index: 3, kind: input, shape index: {}]   ;;  %s3521_s4 = inlined_call_operand.vmem [shape: f32[1,32], index: 4, kind: input, shape index: {}]   ;;  %s3522_s5 = inlined_call_operand.vmem [shape: bf16[112,32], index: 5, kind: input, shape index: {}]   ;;  %s3523_s6 = inlined_call_operand.vmem [shape: f32[1,32], index: 6, kind: input, shape index: {}]   ;;  %s3524_s7 = inlined_call_operand.vmem [shape: bf16[448,1], index: 7, kind: input, shape index: {}]   ;;  %s3525_s8 = inlined_call_operand.vmem [shape: f32[32,1], index: 8, kind: input, shape index: {}]   ;;  %s3526_s9 = inlined_call_operand.<no memory space> [shape: f32[1,1], index: 9, kind: input, shape index: {}]   ;;  %s3527_s10 = inlined_call_operand.vmem [shape: f32[128,32], index: 10, kind: output, shape index: {}]  }
   0x1   :  { %15 = sst [smem:[#allocation2]] %s3526_s9 }
   0x2 LB: > { %s2211_s16 = sadd.s32 4294967295, %s2757_s15   ;;  %p2215_p0 = scmp.ge.s32.totalorder %s2757_s15, 1  ;;  %s2757_s15 = sphi %s2818_s15, %s21_s15  }
   0x3   : > { %p337_p1 = scmp.lt.s32.totalorder %s2757_s15, 3 }
   0x5   : > { %p338_p2 = pnand %p2215_p0, %p337_p1 }
   0x7   : > { %341 = sbr.rel (%p338_p2) target bundleno = 701 (0x2bd), region = 60 }
   0xc   : > { %v2596_v0 = vld [vmem:[%s3520_s3 + $0xb8] sm:$0xff]   ;;  %v2759_v1 = vmov 0   ;;  %v2599_v4 = vld [vmem:[%s3520_s3 + $0xb0] sm:$0xff]   ;;  %v2602_v7 = vld [vmem:[%s3520_s3 + $0xa8] sm:$0xff]   ;;  %s2216_s18 = sshll.u32 %s2211_s16, 3  ;;  %vm735_vm0 = vcmask 523264  }
   0xd   : > { %813 = vmatprep.subr.bf16.mxu1 %v2759_v1  ;;  %v2597_v2 = vld [vmem:[%s3520_s3 + $0x78] sm:$0xff]   ;;  %2595 = vset.pattern.permute.xlu1 %v2759_v1  ;;  %v2600_v5 = vld [vmem:[%s3520_s3 + $0x70] sm:$0xff]   ;;  %v2603_v8 = vld [vmem:[%s3520_s3 + $0x68] sm:$0xff]   ;;  %p387_p3 = scmp.lt.s32.totalorder %s2216_s18, 15  ;;  %vm977_vm1 = vcmask 916480   ;;  %vm1439_vm2 = vcmask 261120  }
   0xe   : > { %814 = vmatpush1.bf16.msra.mxu1 %v2596_v0  ;;  %v2598_v3 = vld [vmem:[%s3520_s3 + $0x38] sm:$0xff]   ;;  %2594 = vset.pattern.permute.xlu0 %v2759_v1  ;;  %v2601_v6 = vld [vmem:[%s3520_s3 + $0x30] sm:$0xff]   ;;  %v2604_v9 = vld [vmem:[%s3520_s3 + $0x28] sm:$0xff]   ;;  %s1135_s20 = sld [smem:[#allocation2]] }
   0xf   : > { %2368 = vmatprep.subr.bf16.mxu0 %v2597_v2  ;;  %815 = vmatprep.subr.bf16.mxu1 %v2759_v1  ;;  %v2605_v10 = vld [vmem:[%s3520_s3 + $0xa0] sm:$0xff]   ;;  %v2609_v13 = vld [vmem:[%s3520_s3 + $0x58] sm:$0xff]   ;;  %s3590_s18 = smov (!%p387_p3, %s2216_s18), 15  ;;  %v2612_v16 = vld [vmem:[%s3520_s3 + $0x50] sm:$0xff]  }
  0x10   : > { %2369 = vmatpush3.bf16.msra.mxu0 %v2598_v3  ;;  %v2606_v11 = vld [vmem:[%s3520_s3 + $0x60] sm:$0xff]   ;;  %v2608_v14 = vld [vmem:[%s3520_s3 + $0x98] sm:$0xff]   ;;  %v2611_v17 = vld [vmem:[%s3520_s3 + $0x90] sm:$0xff]   ;;  %s2348_s13 = sshll.u32 %s3590_s18, 4  ;;  %s2220_s24 = sshll.u32 %s3590_s18, 2 }
  0x11   : > { %2370 = vmatprep.subr.bf16.mxu0 %v2600_v5  ;;  %v2607_v12 = vld [vmem:[%s3520_s3 + $0x20] sm:$0xff]   ;;  %v2610_v15 = vld [vmem:[%s3520_s3 + $0x18] sm:$0xff]   ;;  %v2613_v18 = vld [vmem:[%s3520_s3 + $0x10] sm:$0xff]   ;;  %s2904_s16 = scalar_lea.vmem %s3517_s0, %s2348_s13  ;;  %s2974_s11 = scalar_lea.vmem %s3518_s1, %s2220_s24 }
  0x12   : > { %816 = vmatpush1.bf16.msra.mxu1 %v2599_v4  ;;  %v2615_v19 = vld [vmem:[%s3520_s3 + $0x48] sm:$0xff]   ;;  %v2617_v22 = vld [vmem:[%s3520_s3 + $0x80] sm:$0xff]   ;;  %v2625_v26 = vld [vmem:[%s3522_s5 + $0x30] sm:$0xff]   ;;  %s3191_s14 = scalar_lea.vmem %s3519_s2, %s2220_s24  ;;  %s2224_s21 = sshll.u32 %s3590_s18, 3 }
  0x13   : > { %817 = vmatprep.subr.bf16.mxu1 %v2759_v1  ;;  %v2614_v20 = vld [vmem:[%s3520_s3 + $0x88] sm:$0xff]   ;;  %v2618_v23 = vld [vmem:[%s3520_s3 + $0x40] sm:$0xff]   ;;  %v2620_v27 = vld [vmem:[%s3520_s3 + $0xd8] sm:$0xff]  }
  0x14   : > { %2371 = vmatpush3.bf16.msra.mxu0 %v2601_v6  ;;  %v2616_v21 = vld [vmem:[%s3520_s3 + $0x8] sm:$0xff]   ;;  %v2913_v24 = vld [vmem:[%s2904_s16 + $0x4] ss:$16 sps:$4 sm:$0xff]   ;;  %v2928_v28 = vld [vmem:[%s2904_s16] ss:$16 sps:$4 sm:$0xff]  }
  0x15   : > { %2372 = vmatprep.subr.bf16.mxu0 %v2603_v8  ;;  %v2619_v25 = vld [vmem:[%s3520_s3] sm:$0xff]   ;;  %780 = vmatprep.mubr.bf16.mxu0 %v2913_v24  ;;  %v2630_v30 = vld [vmem:[%s3522_s5 + $0x28] sm:$0xff]   ;;  %v2624_v32 = vld [vmem:[%s3520_s3 + $0xd0] sm:$0xff]  }
  0x16   : > { %818 = vmatpush1.bf16.msra.mxu1 %v2602_v7  ;;  %v2931_v29 = vld [vmem:[%s2904_s16 + $0x24] ss:$16 sps:$4 sm:$0xff]   ;;  %v2937_v31 = vld [vmem:[%s2904_s16 + $0xc] ss:$16 sps:$4 sm:$0xff]   ;;  %v2955_v35 = vld [vmem:[%s2904_s16 + $0x20] ss:$16 sps:$4 sm:$0xff]  }
  0x17   : > { %819 = vmatprep.subr.bf16.mxu1 %v2759_v1  ;;  %2270 = vmatprep.mubr.msk.bf16.mxu1 %vm735_vm0, %v2937_v31  ;;  %v2635_v33 = vld [vmem:[%s3522_s5 + $0x20] sm:$0xff]   ;;  %v2626_v34 = vld [vmem:[%s3520_s3 + $0xc8] sm:$0xff]   ;;  %v2639_v37 = vld [vmem:[%s3522_s5 + $0x18] sm:$0xff]  }
  0x18   : > { %2373 = vmatpush3.bf16.msra.mxu0 %v2604_v9  ;;  %v2958_v36 = vld [vmem:[%s2904_s16 + $0x44] ss:$16 sps:$4 sm:$0xff]   ;;  %v2977_v39 = vld [vmem:[%s2904_s16 + $0x8] ss:$16 sps:$4 sm:$0xff]   ;;  %v2984_v41 = vld [vmem:[%s2904_s16 + $0x2c] ss:$16 sps:$4 sm:$0xff]  }
  0x19   : > { %2374 = vmatprep.subr.bf16.mxu0 %v2606_v11  ;;  %v2631_v38 = vld [vmem:[%s3520_s3 + $0xc0] sm:$0xff]   ;;  %v2643_v40 = vld [vmem:[%s3522_s5 + $0x10] sm:$0xff]   ;;  %v2647_v44 = vld [vmem:[%s3522_s5 + $0x8] sm:$0xff]  }
  0x1a   : > { %820 = vmatpush1.bf16.msra.mxu1 %v2605_v10  ;;  %v2987_v42 = vld [vmem:[%s2904_s16 + $0x40] ss:$16 sps:$4 sm:$0xff]   ;;  %v2990_v43 = vld [vmem:[%s2904_s16 + $0x64] ss:$16 sps:$4 sm:$0xff]   ;;  %v3000_v45 = vld [vmem:[%s2904_s16 + $0x28] ss:$16 sps:$4 sm:$0xff]  }
  0x1b   : > { %821 = vmatprep.subr.bf16.mxu1 %v2759_v1  ;;  %v2651_v46 = vld [vmem:[%s3522_s5] sm:$0xff]   ;;  %v3007_v47 = vld [vmem:[%s2904_s16 + $0x4c] ss:$16 sps:$4 sm:$0xff]   ;;  %v3021_v51 = vld [vmem:[%s2904_s16 + $0x48] ss:$16 sps:$4 sm:$0xff]  }
  0x1c   : > { %2375 = vmatpush3.bf16.msra.mxu0 %v2607_v12  ;;  %v3010_v48 = vld [vmem:[%s2904_s16 + $0x60] ss:$16 sps:$4 sm:$0xff]   ;;  %v2667_v50 = vld [vmem:[%s3524_s7 + $0x78] sm:$0xff]   ;;  %v2653_v54 = vld [vmem:[%s2974_s11 + $0x8] sm:$0xff]  }
  0x1d   : > { %2376 = vmatprep.subr.bf16.mxu0 %v2609_v13  ;;  %v2652_v49 = vld [vmem:[%s2974_s11] sm:$0xff]   ;;  %v2668_v52 = vld [vmem:[%s3524_s7 + $0x38] sm:$0xff]   ;;  %v2670_v55 = vld [vmem:[%s3524_s7 + $0x70] sm:$0xff]  }
  0x1e   : > { %822 = vmatpush1.bf16.msra.mxu1 %v2608_v14  ;;  %v3028_v53 = vld [vmem:[%s2904_s16 + $0x6c] ss:$16 sps:$4 sm:$0xff]   ;;  %v2657_v56 = vld [vmem:[%s2974_s11 + $0x10] sm:$0xff]   ;;  %v3053_v61 = vld [vmem:[%s2904_s16 + $0x68] ss:$16 sps:$4 sm:$0xff]   ;;  %s3454_s16 = scalar_lea.vmem %s3527_s10, %s2224_s21 }
  0x1f   : > { %823 = vmatprep.subr.bf16.mxu1 %v2759_v1  ;;  %v2671_v57 = vld [vmem:[%s3524_s7 + $0x30] sm:$0xff]   ;;  %v2659_v58 = vld [vmem:[%s3524_s7 + $0xb8] sm:$0xff]   ;;  %v2673_v59 = vld [vmem:[%s3524_s7 + $0x68] sm:$0xff]  }
  0x20   : > { %2377 = vmatpush3.bf16.msra.mxu0 %v2610_v15  ;;  %v2674_v60 = vld [vmem:[%s3524_s7 + $0x28] sm:$0xff]   ;;  %v2676_v62 = vld [vmem:[%s3524_s7 + $0x60] sm:$0xff]   ;;  %v2660_v63 = vld [vmem:[%s3524_s7 + $0xb0] sm:$0xff]  }
  0x21   : > { %2378 = vmatprep.subr.bf16.mxu0 %v2612_v16  ;;  %v2658_v0 = vld [vmem:[%s2974_s11 + $0x18] sm:$0xff]   ;;  %v2677_v2 = vld [vmem:[%s3524_s7 + $0x20] sm:$0xff]   ;;  %v2661_v4 = vld [vmem:[%s3524_s7 + $0xa8] sm:$0xff]  }
  0x22   : > { %824 = vmatpush1.bf16.msra.mxu1 %v2611_v17  ;;  %v2679_v3 = vld [vmem:[%s3524_s7 + $0x58] sm:$0xff]   ;;  %v2681_v6 = vld [vmem:[%s3524_s7 + $0x50] sm:$0xff]   ;;  %v2662_v7 = vld [vmem:[%s3524_s7 + $0xa0] sm:$0xff]  }
  0x23   : > { %825 = vmatprep.subr.bf16.mxu1 %v2759_v1  ;;  %v2680_v5 = vld [vmem:[%s3524_s7 + $0x18] sm:$0xff]   ;;  %v2682_v8 = vld [vmem:[%s3524_s7 + $0x10] sm:$0xff]   ;;  %v2683_v9 = vld [vmem:[%s3524_s7 + $0x48] sm:$0xff]  }
  0x24   : > { %2379 = vmatpush3.bf16.msra.mxu0 %v2613_v18  ;;  %v2663_v10 = vld [vmem:[%s3524_s7 + $0x98] sm:$0xff]   ;;  %v2684_v11 = vld [vmem:[%s3524_s7 + $0x8] sm:$0xff]   ;;  %v2685_v12 = vld [vmem:[%s3524_s7 + $0x40] sm:$0xff]  }
  0x25   : > { %2380 = vmatprep.subr.bf16.mxu0 %v2615_v19  ;;  %v2664_v13 = vld [vmem:[%s3524_s7 + $0x90] sm:$0xff]   ;;  %v2686_v14 = vld [vmem:[%s3524_s7] sm:$0xff]   ;;  %v2665_v15 = vld [vmem:[%s3524_s7 + $0x88] sm:$0xff]  }
  0x26   : > { %826 = vmatpush1.bf16.msra.mxu1 %v2614_v20  ;;  %v3119_v16 = vld [vmem:[%s3525_s8 + $0x18] sm:$0xff]  ;;  %v2666_v17 = vld [vmem:[%s3524_s7 + $0x80] sm:$0xff]   ;;  %v3131_v18 = vld [vmem:[%s3525_s8 + $0x10] sm:$0xff] }
  0x27   : > { %827 = vmatprep.subr.bf16.mxu1 %v2759_v1  ;;  %v2669_v19 = vld [vmem:[%s3524_s7 + $0xd8] sm:$0xff]   ;;  %v3143_v20 = vld [vmem:[%s3525_s8 + $0x8] sm:$0xff] }
  0x28   : > { %2381 = vmatpush3.bf16.msra.mxu0 %v2616_v21  ;;  %v2672_v21 = vld [vmem:[%s3524_s7 + $0xd0] sm:$0xff]  }
  0x29   : > { %2382 = vmatprep.subr.bf16.mxu0 %v2618_v23  ;;  %v2675_v23 = vld [vmem:[%s3524_s7 + $0xc8] sm:$0xff]  }
  0x2a   : > { %828 = vmatpush1.bf16.msra.mxu1 %v2617_v22  ;;  %v3154_v22 = vld [vmem:[%s3525_s8] sm:$0xff] }
  0x2b   : > { %837 = vmatprep.subr.bf16.mxu1 %v2759_v1 }
  0x2c   : > { %2383 = vmatpush3.bf16.msra.mxu0 %v2619_v25 }
  0x2d   : > { %2495 = vmatprep.subr.bf16.mxu0 %v2625_v26 }
  0x2e   : > { %838 = vmatpush2.bf16.msra.mxu1 %v2620_v27 }
  0x2f   : > { %781 = vmatmul.mubr.bf16.vlgmr.msra.gmra.mxu0 %v2928_v28  ;;  %839 = vmatprep.subr.bf16.mxu1 %v2759_v1 }
  0x30   : > { %2496 = vmatpush3.bf16.msra.mxu0 %v2625_v26  ;;  %788 = vmatprep.mubr.bf16.mxu0 %v2931_v29  ;;  %v3205_v26 = vld [vmem:[%s3191_s14 + $0x8] sm:$0xff]  }
  0x31   : > { %2497 = vmatprep.subr.bf16.mxu0 %v2630_v30 }
  0x32   : > { %840 = vmatpush2.bf16.msra.mxu1 %v2624_v32 }
  0x33   : > { %841 = vmatprep.subr.bf16.mxu1 %v2759_v1 }
  0x34   : > { %2498 = vmatpush3.bf16.msra.mxu0 %v2630_v30 }
  0x35   : > { %2499 = vmatprep.subr.bf16.mxu0 %v2635_v33 }
  0x36   : > { %842 = vmatpush2.bf16.msra.mxu1 %v2626_v34 }
  0x37   : > { %789 = vmatmul.mubr.bf16.gmra.mxu0 %v2955_v35  ;;  %843 = vmatprep.subr.bf16.mxu1 %v2759_v1 }
  0x38   : > { %2500 = vmatpush3.bf16.msra.mxu0 %v2635_v33  ;;  %796 = vmatprep.mubr.bf16.mxu0 %v2958_v36 }
  0x39   : > { %2501 = vmatprep.subr.bf16.mxu0 %v2639_v37 }
  0x3a   : > { %844 = vmatpush2.bf16.msra.mxu1 %v2631_v38 }
  0x3b   : > { %2419 = vmatprep.subr.bf16.mxu1 %v2667_v50 }
  0x3c   : > { %2502 = vmatpush3.bf16.msra.mxu0 %v2639_v37  ;;  %v3222_v37 = vld [vmem:[%s3521_s4] ss:$0 sm:$0xff] }
  0x3d   : > { %846 = vmatmul.mubr.bf16.vlgmr.msra.gmra.mxu1 %v2977_v39  ;;  %2503 = vmatprep.subr.bf16.mxu0 %v2643_v40 }
  0x3e   : > { %2271 = vmatprep.mubr.msk.bf16.mxu1 %vm735_vm0, %v2984_v41  ;;  %2420 = vmatpush3.bf16.msra.mxu1 %v2668_v52 }
  0x3f   : > { %797 = vmatmul.mubr.bf16.gmra.mxu0 %v2987_v42  ;;  %2421 = vmatprep.subr.bf16.mxu1 %v2670_v55 }
  0x40   : > { %2504 = vmatpush3.bf16.msra.mxu0 %v2643_v40  ;;  %804 = vmatprep.mubr.bf16.mxu0 %v2990_v43 }
  0x41   : > { %2505 = vmatprep.subr.bf16.mxu0 %v2647_v44 }
  0x42   : > { %2422 = vmatpush3.bf16.msra.mxu1 %v2671_v57 }
  0x43   : > { %2423 = vmatprep.subr.bf16.mxu1 %v2673_v59 }
  0x44   : > { %2506 = vmatpush3.bf16.msra.mxu0 %v2647_v44 }
  0x45   : > { %854 = vmatmul.mubr.bf16.gmra.mxu1 %v3000_v45  ;;  %2507 = vmatprep.subr.bf16.mxu0 %v2651_v46 }
  0x46   : > { %2272 = vmatprep.mubr.msk.bf16.mxu1 %vm735_vm0, %v3007_v47  ;;  %2424 = vmatpush3.bf16.msra.mxu1 %v2674_v60 }
  0x47   : > { %805 = vmatmul.mubr.bf16.gmra.mxu0 %v3010_v48  ;;  %2425 = vmatprep.subr.bf16.mxu1 %v2676_v62 }
  0x48   : > { %2508 = vmatpush3.bf16.msra.mxu0 %v2651_v46  ;;  %2509 = vmatprep.mubr.msk.bf16.mxu0 %vm977_vm1, %v2652_v49 }
  0x49   : > { %1370 = vmatprep.subr.bf16.mxu0 %v2759_v1 }
  0x4a   : > { %2426 = vmatpush3.bf16.msra.mxu1 %v2677_v2 }
  0x4b   : > { %2427 = vmatprep.subr.bf16.mxu1 %v2679_v3 }
  0x4d   : > { %862 = vmatmul.mubr.bf16.gmra.mxu1 %v3021_v51 }
  0x4e   : > { %2273 = vmatprep.mubr.msk.bf16.mxu1 %vm735_vm0, %v3028_v53  ;;  %2428 = vmatpush3.bf16.msra.mxu1 %v2680_v5 }
  0x4f   : > { %2510 = vmatmul.mubr.msk.bf16.vlgmr.msra.gmra.mxu0 %vm977_vm1, %v2653_v54  ;;  %2429 = vmatprep.subr.bf16.mxu1 %v2681_v6 }
  0x50   : > { %2513 = vmatprep.mubr.msk.bf16.mxu0 %vm977_vm1, %v2657_v56  ;;  %1371 = vmatpush1.bf16.msra.mxu0 %v2659_v58 }
  0x51   : > { %1372 = vmatprep.subr.bf16.mxu0 %v2759_v1 }
  0x52   : > { %2430 = vmatpush3.bf16.msra.mxu1 %v2682_v8 }
  0x53   : > { %2431 = vmatprep.subr.bf16.mxu1 %v2683_v9 }
  0x54   : > { %1373 = vmatpush1.bf16.msra.mxu0 %v2660_v63 }
  0x55   : > { %870 = vmatmul.mubr.bf16.gmra.mxu1 %v3053_v61  ;;  %1374 = vmatprep.subr.bf16.mxu0 %v2759_v1 }
  0x56   : > { %1337 = vmatprep.mubr.bf16.mxu1 %v2913_v24  ;;  %2432 = vmatpush3.bf16.msra.mxu1 %v2684_v11  ;;  %v2678_v24 = vld [vmem:[%s3524_s7 + $0xc0] sm:$0xff]  }
  0x57   : > { %2514 = vmatmul.mubr.msk.bf16.gmra.mxu0 %vm977_vm1, %v2658_v0  ;;  %2433 = vmatprep.subr.bf16.mxu1 %v2685_v12 }
  0x58   : > { %1375 = vmatpush1.bf16.msra.mxu0 %v2661_v4  ;;  %2318 = vmatprep.mubr.msk.bf16.mxu0 %vm735_vm0, %v2937_v31 }
  0x59   : > { %1376 = vmatprep.subr.bf16.mxu0 %v2759_v1 }
  0x5a   : > { %2434 = vmatpush3.bf16.msra.mxu1 %v2686_v14 }
  0x5b   : > { %2517 = vmatprep.subr.mxu1 %v3119_v16 }
  0x5c   : > { %1377 = vmatpush1.bf16.msra.mxu0 %v2662_v7 }
  0x5d   : > { %1378 = vmatprep.subr.bf16.mxu0 %v2759_v1  ;;  %1338 = vmatmul.mubr.bf16.vlgmr.msra.gmra.mxu1 %v2928_v28  ;;  %v3540_v28 = vunpack.c.l.bf16 %v3205_v26 }
  0x5e   : > { %1345 = vmatprep.mubr.bf16.mxu1 %v2931_v29  ;;  %2518 = vmatpush3.msra.mxu1 %v3119_v16  ;;  %v3543_v29 = vunpack.c.h.bf16 %v3205_v26 }
  0x5f   : > { %2519 = vmatprep.subr.mxu1 %v3131_v18 }
  0x60   : > { %1379 = vmatpush1.bf16.msra.mxu0 %v2663_v10  ;;  %2520 = vmatpush3.msra.mxu1 %v3131_v18 }
  0x61   : > { %1380 = vmatprep.subr.bf16.mxu0 %v2759_v1  ;;  %2521 = vmatprep.subr.mxu1 %v3143_v20 }
  0x62   : > { %2522 = vmatpush3.msra.mxu1 %v3143_v20 }
  0x63   : > { %2523 = vmatprep.subr.mxu1 %v3154_v22 }
  0x64   : > { %1381 = vmatpush1.bf16.msra.mxu0 %v2664_v13  ;;  %2524 = vmatpush3.msra.mxu1 %v3154_v22 }
  0x65   : > { %1382 = vmatprep.subr.bf16.mxu0 %v2759_v1  ;;  %1346 = vmatmul.mubr.bf16.gmra.mxu1 %v2955_v35 }
  0x66   : > { %1353 = vmatprep.mubr.bf16.mxu1 %v2958_v36  ;;  %2537 = vmatprep.subr.mxu1 %v3119_v16 }
  0x68   : > { %1383 = vmatpush1.bf16.msra.mxu0 %v2665_v15 }
  0x69   : > { %1384 = vmatprep.subr.bf16.mxu0 %v2759_v1 }
  0x6c   : > { %1385 = vmatpush1.bf16.msra.mxu0 %v2666_v17 }
  0x6d   : > { %1394 = vmatprep.subr.bf16.mxu0 %v2759_v1  ;;  %1354 = vmatmul.mubr.bf16.gmra.mxu1 %v2987_v42 }
  0x6e   : > { %1361 = vmatprep.mubr.bf16.mxu1 %v2990_v43 }
  0x70   : > { %1395 = vmatpush2.bf16.msra.mxu0 %v2669_v19 }
  0x71   : > { %1396 = vmatprep.subr.bf16.mxu0 %v2759_v1 }
  0x74   : > { %1397 = vmatpush2.bf16.msra.mxu0 %v2672_v21 }
  0x75   : > { %1398 = vmatprep.subr.bf16.mxu0 %v2759_v1  ;;  %1362 = vmatmul.mubr.bf16.gmra.mxu1 %v3010_v48 }
  0x78   : > { %1399 = vmatpush2.bf16.msra.mxu0 %v2675_v23 }
  0x79   : > { %1400 = vmatprep.subr.bf16.mxu0 %v2759_v1  ;;  %v3197_v1 = vld [vmem:[%s3191_s14] sm:$0xff]  }
  0x7a   : > { %v3545_v25 = vunpack.c.l.bf16 %v3197_v1  ;;  %v3549_v27 = vunpack.c.h.bf16 %v3197_v1 }
  0x7c   : > { %1401 = vmatpush2.bf16.msra.mxu0 %v2678_v24 }
  0x7d   : > { %2557 = vmatprep.subr.mxu0 %v3119_v16 }
  0x7f   : > { %1403 = vmatmul.mubr.bf16.vlgmr.msra.gmra.mxu0 %v2977_v39 }
  0x80   : > { %2319 = vmatprep.mubr.msk.bf16.mxu0 %vm735_vm0, %v2984_v41  ;;  %2558 = vmatpush3.msra.mxu0 %v3119_v16 }
  0x81   : > { %2559 = vmatprep.subr.mxu0 %v3131_v18 }
  0x82   : > { %2560 = vmatpush3.msra.mxu0 %v3131_v18 }
  0x83   : > { %2561 = vmatprep.subr.mxu0 %v3143_v20 }
  0x84   : > { %2562 = vmatpush3.msra.mxu0 %v3143_v20 }
  0x85   : > { %2563 = vmatprep.subr.mxu0 %v3154_v22 }
  0x86   : > { %2564 = vmatpush3.msra.mxu0 %v3154_v22 }
  0x87   : > { %1411 = vmatmul.mubr.bf16.gmra.mxu0 %v3000_v45 }
  0x88   : > { %2320 = vmatprep.mubr.msk.bf16.mxu0 %vm735_vm0, %v3007_v47 }
  0x8f   : > { %1419 = vmatmul.mubr.bf16.gmra.mxu0 %v3021_v51 }
  0x90   : > { %2321 = vmatprep.mubr.msk.bf16.mxu0 %vm735_vm0, %v3028_v53 }
  0x97   : > { %1427 = vmatmul.mubr.bf16.gmra.mxu0 %v3053_v61 }
  0x98   : > { %2565 = vmatprep.mubr.msk.f32.mxu0 %vm1439_vm2, %v3545_v25 }
  0x9f   : > { %2566 = vmatmul.mubr.msk.f32.vlgmr.msra.gmra.mxu0 %vm1439_vm2, %v3549_v27 }
  0xa0   : > { %2568 = vmatprep.mubr.msk.f32.mxu0 %vm1439_vm2, %v3540_v28 }
  0xa3   : > { %2569 = vmatmul.mubr.msk.f32.gmra.mxu0 %vm1439_vm2, %v3543_v29 }
  0xef   : > { %v2384_v30 = vpop.f32.mrf.mxu0 }
  0xf1   : > { %v2385_v31 = vpop.f32.mrf.mxu0 }
  0xf2   : > { %v2386_v35 = vadd.f32 %v2385_v31, %v2384_v30 }
  0xf3   : > { %v2387_v32 = vpop.f32.mrf.mxu0 }
  0xf4   : > { %v783_v40 = vadd.f32 %v2386_v35, %v3222_v37 }
  0xf5   : > { %v2388_v33 = vpop.f32.mrf.mxu0 }
  0xf6   : > { %v2389_v39 = vadd.f32 %v2388_v33, %v2387_v32 }
  0xf7   : > { %v2390_v34 = vpop.f32.mrf.mxu0 }
  0xf8   : > { %v786_v48 = vadd.f32 %v2389_v39, %v3222_v37 }
  0xf9   : > { %v2391_v36 = vpop.f32.mrf.mxu0 }
  0xfa   : > { %v2392_v46 = vadd.f32 %v2391_v36, %v2390_v34 }
  0xfb   : > { %v2393_v38 = vpop.f32.mrf.mxu0 }
  0xfc   : > { %v791_v56 = vadd.f32 %v2392_v46, %v3222_v37 }
  0xfd   : > { %v847_v41 = vpop.f32.mrf.mxu1  ;;  %v2394_v42 = vpop.f32.mrf.mxu0 }
  0xfe   : > { %v3225_v43 = vadd.f32 %v847_v41, %v783_v40  ;;  %v2395_v54 = vadd.f32 %v2394_v42, %v2393_v38  ;;  %v2274_v38 = vld [vmem:[%s3523_s6] ss:$0 sm:$0xff] }
  0xff   : > { %v849_v44 = vpop.f32.mrf.mxu1  ;;  %v2396_v45 = vpop.f32.mrf.mxu0 }
 0x100   : > { %v3547_v47 = vmax.f32 %v3225_v43, 0.0  ;;  %v794_v0 = vadd.f32 %v2395_v54, %v3222_v37 }
 0x101   : > { %v850_v49 = vpop.f32.mrf.mxu1  ;;  %v2397_v50 = vpop.f32.mrf.mxu0 }
 0x102   : > { %v3229_v51 = vadd.f32 %v850_v49, %v786_v48  ;;  %2525 = vmatprep.mubr.msk.f32.mxu1 %vm1439_vm2, %v3547_v47  ;;  %v2398_v62 = vadd.f32 %v2397_v50, %v2396_v45 }
 0x103   : > { %v852_v52 = vpop.f32.mrf.mxu1  ;;  %v2399_v53 = vpop.f32.mrf.mxu0 }
 0x104   : > { %v3550_v55 = vmax.f32 %v3229_v51, 0.0  ;;  %v799_v9 = vadd.f32 %v2398_v62, %v3222_v37 }
 0x105   : > { %v855_v57 = vpop.f32.mrf.mxu1  ;;  %v2400_v58 = vpop.f32.mrf.mxu0 }
 0x106   : > { %v3236_v59 = vadd.f32 %v855_v57, %v791_v56  ;;  %2526 = vmatmul.mubr.msk.f32.vlgmr.msra.gmra.mxu1 %vm1439_vm2, %v3550_v55  ;;  %v2401_v7 = vadd.f32 %v2400_v58, %v2399_v53 }
 0x107   : > { %v857_v60 = vpop.f32.mrf.mxu1  ;;  %v2402_v61 = vpop.f32.mrf.mxu0  ;;  %2538 = vmatpush3.msra.mxu1 %v3119_v16 }
 0x108   : > { %v3541_v63 = vmax.f32 %v3236_v59, 0.0  ;;  %2539 = vmatprep.subr.mxu1 %v3131_v18  ;;  %v802_v19 = vadd.f32 %v2401_v7, %v3222_v37 }
 0x109   : > { %v858_v2 = vpop.f32.mrf.mxu1  ;;  %v2403_v3 = vpop.f32.mrf.mxu0  ;;  %2540 = vmatpush3.msra.mxu1 %v3131_v18 }
 0x10a   : > { %v3246_v4 = vadd.f32 %v858_v2, %v794_v0  ;;  %2528 = vmatprep.mubr.msk.f32.mxu1 %vm1439_vm2, %v3541_v63  ;;  %2541 = vmatprep.subr.mxu1 %v3143_v20  ;;  %v2404_v15 = vadd.f32 %v2403_v3, %v2402_v61 }
 0x10b   : > { %v860_v5 = vpop.f32.mrf.mxu1  ;;  %v2405_v6 = vpop.f32.mrf.mxu0  ;;  %2542 = vmatpush3.msra.mxu1 %v3143_v20 }
 0x10c   : > { %v3544_v8 = vmax.f32 %v3246_v4, 0.0  ;;  %2543 = vmatprep.subr.mxu1 %v3154_v22  ;;  %v807_v34 = vadd.f32 %v2404_v15, %v3222_v37 }
 0x10d   : > { %v863_v10 = vpop.f32.mrf.mxu1  ;;  %v2406_v11 = vpop.f32.mrf.mxu0  ;;  %2544 = vmatpush3.msra.mxu1 %v3154_v22 }
 0x10e   : > { %v3257_v12 = vadd.f32 %v863_v10, %v799_v9  ;;  %2529 = vmatmul.mubr.msk.f32.gmra.mxu1 %vm1439_vm2, %v3544_v8  ;;  %2577 = vmatprep.subr.mxu1 %v3119_v16  ;;  %v2407_v32 = vadd.f32 %v2406_v11, %v2405_v6  ;;  %v3348_v10 = vld [vmem:[%s3191_s14 + $0x18] sm:$0xff]  }
 0x10f   : > { %v865_v13 = vpop.f32.mrf.mxu1  ;;  %v2511_v14 = vpop.f32.mrf.mxu0  ;;  %3560 = vst [vmem:[#allocation6_spill] sm:$0xff] %v3348_v10  ;;  %v3528_v11 = vunpack.c.l.bf16 %v3348_v10 }
 0x110   : > { %v3536_v17 = vmax.f32 %v3257_v12, 0.0  ;;  %v810_v44 = vadd.f32 %v2407_v32, %v3222_v37  ;;  %v3292_v56 = vadd.f32 %v2511_v14, %v2274_v38  ;;  %v3529_v13 = vunpack.c.h.bf16 %v3348_v10 }
 0x111   : > { %v866_v21 = vpop.f32.mrf.mxu1  ;;  %v1024_v23 = vpop.f32.mrf.mxu0 }
 0x112   : > { %v3265_v24 = vadd.f32 %v866_v21, %v802_v19  ;;  %2531 = vmatprep.mubr.msk.f32.mxu1 %vm1439_vm2, %v3536_v17  ;;  %v3282_v45 = vadd.f32 %v2274_v38, %v1024_v23  ;;  %v3542_v62 = vmax.f32 %v3292_v56, 0.0 }
 0x113   : > { %v868_v30 = vpop.f32.mrf.mxu1  ;;  %v2512_v31 = vpop.f32.mrf.mxu0 }
 0x114   : > { %v3537_v33 = vmax.f32 %v3265_v24, 0.0  ;;  %v3548_v37 = vmax.f32 %v3282_v45, 0.0  ;;  %v3303_v60 = vadd.f32 %v2512_v31, %v2274_v38 }
 0x115   : > { %v871_v35 = vpop.f32.mrf.mxu1  ;;  %v1027_v36 = vpop.f32.mrf.mxu0 }
 0x116   : > { %v3275_v39 = vadd.f32 %v871_v35, %v807_v34  ;;  %2532 = vmatmul.mubr.msk.f32.gmra.mxu1 %vm1439_vm2, %v3537_v33  ;;  %v3289_v53 = vadd.f32 %v2274_v38, %v1027_v36  ;;  %v3546_v5 = vmax.f32 %v3303_v60, 0.0 }
 0x117   : > { %v873_v40 = vpop.f32.mrf.mxu1  ;;  %v2515_v41 = vpop.f32.mrf.mxu0 }
 0x118   : > { %3557 = vst [vmem:[#allocation3_spill] sm:$0xff] %v3275_v39  ;;  %v3530_v42 = vmax.f32 %v3275_v39, 0.0  ;;  %v3551_v61 = vmax.f32 %v3289_v53, 0.0  ;;  %v3312_v2 = vadd.f32 %v2515_v41, %v2274_v38 }
 0x119   : > { %v874_v46 = vpop.f32.mrf.mxu1  ;;  %v1040_v48 = vpop.f32.mrf.mxu0 }
 0x11a   : > { %v3284_v49 = vadd.f32 %v874_v46, %v810_v44  ;;  %2534 = vmatprep.mubr.msk.f32.mxu1 %vm1439_vm2, %v3530_v42  ;;  %v3301_v57 = vadd.f32 %v2274_v38, %v1040_v48  ;;  %3559 = vst [vmem:[#allocation5_spill] sm:$0xff] %v3312_v2  ;;  %v3532_v7 = vmax.f32 %v3312_v2, 0.0 }
 0x11b   : > { %v876_v50 = vpop.f32.mrf.mxu1  ;;  %v2516_v52 = vpop.f32.mrf.mxu0 }
 0x11c   : > { %3558 = vst [vmem:[#allocation4_spill] sm:$0xff] %v3284_v49  ;;  %v3531_v54 = vmax.f32 %v3284_v49, 0.0  ;;  %v3538_v3 = vmax.f32 %v3301_v57, 0.0 }
 0x11d   : > { %v1043_v58 = vpop.f32.mrf.mxu0  ;;  %v2435_v48 = vpop.f32.mrf.mxu1 }
 0x11e   : > { %2535 = vmatmul.mubr.msk.f32.gmra.mxu1 %vm1439_vm2, %v3531_v54  ;;  %v3310_v0 = vadd.f32 %v2274_v38, %v1043_v58 }
 0x11f   : > { %2545 = vmatprep.mubr.msk.f32.mxu1 %vm1439_vm2, %v3548_v37  ;;  %v2436_v50 = vpop.f32.mrf.mxu1 }
 0x120   : > { %v3539_v6 = vmax.f32 %v3310_v0, 0.0 }
 0x122   : > { %2546 = vmatmul.mubr.msk.f32.vlgmr.msra.gmra.mxu1 %vm1439_vm2, %v3551_v61 }
 0x123   : > { %2548 = vmatprep.mubr.msk.f32.mxu1 %vm1439_vm2, %v3542_v62  ;;  %2581 = vmatpush3.msra.mxu1 %v3119_v16  ;;  %v3332_v16 = vadd.f32 %v2516_v52, %v2274_v38  ;;  %v2438_v52 = vpop.f32.mrf.mxu1 }
 0x124   : > { %2578 = vmatprep.subr.mxu1 %v3131_v18 }
 0x125   : > { %2582 = vmatpush3.msra.mxu1 %v3131_v18  ;;  %v3336_v18 = vld [vmem:[%s3191_s14 + $0x10] sm:$0xff]   ;;  %v2439_v58 = vpop.f32.mrf.mxu1 }
 0x126   : > { %2549 = vmatmul.mubr.msk.f32.gmra.mxu1 %vm1439_vm2, %v3546_v5  ;;  %2579 = vmatprep.subr.mxu1 %v3143_v20  ;;  %v3534_v9 = vunpack.c.l.bf16 %v3336_v18  ;;  %v2440_v33 = vadd.f32 %v2439_v58, %v2438_v52 }
 0x127   : > { %2551 = vmatprep.mubr.msk.f32.mxu1 %vm1439_vm2, %v3538_v3  ;;  %2583 = vmatpush3.msra.mxu1 %v3143_v20  ;;  %v3533_v20 = vmax.f32 %v3332_v16, 0.0  ;;  %v1136_v3 = vstv %s1135_s20 }
 0x128   : > { %2580 = vmatprep.subr.mxu1 %v3154_v22  ;;  %v1343_v62 = vadd.f32 %v2440_v33, %v1136_v3 }
 0x129   : > { %2584 = vmatpush3.msra.mxu1 %v3154_v22  ;;  %v3535_v22 = vunpack.c.h.bf16 %v3336_v18 }
 0x12a   : > { %2552 = vmatmul.mubr.msk.f32.gmra.mxu1 %vm1439_vm2, %v3539_v6  ;;  %v2437_v6 = vadd.f32 %v2436_v50, %v2435_v48 }
 0x12b   : > { %2554 = vmatprep.mubr.msk.f32.mxu1 %vm1439_vm2, %v3532_v7 }
 0x12c   : > { %v1340_v25 = vadd.f32 %v2437_v6, %v1136_v3 }
 0x12e   : > { %2555 = vmatmul.mubr.msk.f32.gmra.mxu1 %vm1439_vm2, %v3533_v20 }
 0x12f   : > { %2571 = vmatprep.mubr.msk.f32.mxu1 %vm1439_vm2, %v3534_v9 }
 0x132   : > { %2572 = vmatmul.mubr.msk.f32.vlgmr.msra.gmra.mxu1 %vm1439_vm2, %v3535_v22 }
 0x133   : > { %2574 = vmatprep.mubr.msk.f32.mxu1 %vm1439_vm2, %v3528_v11 }
 0x136   : > { %2575 = vmatmul.mubr.msk.f32.gmra.mxu1 %vm1439_vm2, %v3529_v13 }
 0x13f   : > { %v1404_v14 = vpop.f32.mrf.mxu0 }
 0x140   : > { %v1405_v58 = vadd.f32 %v1404_v14, %v1340_v25 }
 0x141   : > { %v1406_v15 = vpop.f32.mrf.mxu0 }
 0x142   : > { %v2441_v15 = vpop.f32.mrf.mxu1 }
 0x143   : > { %v1407_v19 = vpop.f32.mrf.mxu0 }
 0x144   : > { %v1408_v61 = vadd.f32 %v1407_v19, %v1343_v62 }
 0x145   : > { %v1409_v21 = vpop.f32.mrf.mxu0 }
 0x146   : > { %v2442_v21 = vpop.f32.mrf.mxu1 }
 0x147   : > { %v3368_v23 = vpop.f32.mrf.mxu0  ;;  %v2443_v29 = vadd.f32 %v2442_v21, %v2441_v15 }
 0x149   : > { %v1414_v30 = vpop.f32.mrf.mxu0  ;;  %v1348_v10 = vadd.f32 %v2443_v29, %v1136_v3 }
 0x14a   : > { %v2444_v30 = vpop.f32.mrf.mxu1 }
 0x14b   : > { %v1415_v31 = vpop.f32.mrf.mxu0 }
 0x14d   : > { %v1417_v32 = vpop.f32.mrf.mxu0 }
 0x14e   : > { %v2445_v32 = vpop.f32.mrf.mxu1 }
 0x14f   : > { %v3370_v34 = vpop.f32.mrf.mxu0  ;;  %v2446_v28 = vadd.f32 %v2445_v32, %v2444_v30 }
 0x150   : > { %v2447_v11 = vpop.f32.mrf.mxu1 }
 0x151   : > { %v1422_v35 = vpop.f32.mrf.mxu0  ;;  %v1351_v5 = vadd.f32 %v2446_v28, %v1136_v3 }
 0x152   : > { %v2448_v13 = vpop.f32.mrf.mxu1 }
 0x153   : > { %v3372_v36 = vpop.f32.mrf.mxu0  ;;  %v2449_v37 = vadd.f32 %v2448_v13, %v2447_v11  ;;  %v1416_v30 = vadd.f32 %v1415_v31, %v1351_v5 }
 0x154   : > { %v2450_v35 = vpop.f32.mrf.mxu1 }
 0x155   : > { %v1425_v38 = vpop.f32.mrf.mxu0  ;;  %v1356_v32 = vadd.f32 %v2449_v37, %v1136_v3 }
 0x156   : > { %v2451_v42 = vpop.f32.mrf.mxu1 }
 0x157   : > { %v3374_v40 = vpop.f32.mrf.mxu0  ;;  %v2452_v27 = vadd.f32 %v2451_v42, %v2450_v35  ;;  %v1413_v42 = vadd.f32 %v3368_v23, %v1348_v10  ;;  %v3388_v5 = vadd.f32 %v3370_v34, %v1356_v32 }
 0x158   : > { %v2453_v54 = vpop.f32.mrf.mxu1 }
 0x159   : > { %v1430_v41 = vpop.f32.mrf.mxu0  ;;  %v1359_v15 = vadd.f32 %v2452_v27, %v1136_v3 }
 0x15a   : > { %v2454_v38 = vpop.f32.mrf.mxu1 }
 0x15b   : > { %v3376_v44 = vpop.f32.mrf.mxu0  ;;  %v2455_v39 = vadd.f32 %v2454_v38, %v2453_v54  ;;  %v1424_v27 = vadd.f32 %v3372_v36, %v1359_v15 }
 0x15c   : > { %v2456_v7 = vpop.f32.mrf.mxu1 }
 0x15d   : > { %v1433_v46 = vpop.f32.mrf.mxu0  ;;  %v1364_v62 = vadd.f32 %v2455_v39, %v1136_v3 }
 0x15e   : > { %v2457_v20 = vpop.f32.mrf.mxu1 }
 0x15f   : > { %v2567_v47 = vpop.f32.mrf.mxu0  ;;  %v2458_v21 = vadd.f32 %v2457_v20, %v2456_v7 }
 0x160   : > { %v1794_v6 = vadd.f32 %v2567_v47, %v1408_v61 }
 0x161   : > { %v1788_v33 = vpop.f32.mrf.mxu0  ;;  %v1367_v37 = vadd.f32 %v2458_v21, %v1136_v3 }
 0x162   : > { %v1789_v54 = vadd.f32 %v1788_v33, %v1405_v58 }
 0x163   : > { %v2570_v13 = vpop.f32.mrf.mxu0 }
 0x164   : > { %v1804_v10 = vadd.f32 %v2570_v13, %v1416_v30 }
 0x165   : > { %v1798_v23 = vpop.f32.mrf.mxu0 }
 0x166   : > { %v1799_v33 = vadd.f32 %v1798_v23, %v1413_v42 }
 0x1c6   : > { %v2527_v41 = vpop.f32.mrf.mxu1 }
 0x1c7   : > { %v1536_v48 = vadd.f32 %v2527_v41, %v1408_v61 }
 0x1c8   : > { %v1530_v9 = vpop.f32.mrf.mxu1 }
 0x1c9   : > { %v1531_v28 = vadd.f32 %v1530_v9, %v1405_v58 }
 0x1ce   : > { %v2530_v46 = vpop.f32.mrf.mxu1 }
 0x1cf   : > { %v1546_v7 = vadd.f32 %v2530_v46, %v1416_v30 }
 0x1d0   : > { %v1540_v22 = vpop.f32.mrf.mxu1 }
 0x1d1   : > { %v1541_v39 = vadd.f32 %v1540_v22, %v1413_v42 }
 0x1d6   : > { %v3378_v17 = vpop.f32.mrf.mxu1 }
 0x1d8   : > { %v3380_v63 = vpop.f32.mrf.mxu1 }
 0x1de   : > { %v3382_v8 = vpop.f32.mrf.mxu1 }
 0x1e0   : > { %v3384_v55 = vpop.f32.mrf.mxu1 }
 0x1e2   : > { %v2547_v52 = vpop.f32.mrf.mxu1 }
 0x1e3   : > { %v1665_v50 = vadd.f32 %v2547_v52, %v1408_v61 }
 0x1e4   : > { %v1659_v49 = vpop.f32.mrf.mxu1 }
 0x1e5   : > { %v1828_v2 = vmax.f32 %v1536_v48, %v1665_v50  ;;  %v1660_v11 = vadd.f32 %v1659_v49, %v1405_v58 }
 0x1e6   : > { %v2550_v29 = vpop.f32.mrf.mxu1 }
 0x1e7   : > { %v1836_v19 = vmax.f32 %v1828_v2, %v1794_v6  ;;  %v1827_v25 = vmax.f32 %v1531_v28, %v1660_v11  ;;  %v1675_v14 = vadd.f32 %v2550_v29, %v1416_v30 }
 0x1e8   : > { %v1669_v47 = vpop.f32.mrf.mxu1 }
 0x1e9   : > { %v1844_v61 = vsub.f32 %v1536_v48, %v1836_v19  ;;  %v1868_v9 = vsub.f32 %v1665_v50, %v1836_v19  ;;  %v1892_v49 = vsub.f32 %v1794_v6, %v1836_v19  ;;  %v1835_v20 = vmax.f32 %v1827_v25, %v1789_v54 }
 0x1ea   : > { %v1830_v31 = vmax.f32 %v1546_v7, %v1675_v14  ;;  %v1670_v35 = vadd.f32 %v1669_v47, %v1413_v42  ;;  %v2553_v2 = vpop.f32.mrf.mxu1 }
 0x1eb   : > { %v1853_v38 = vmul.f32 1.442695, %v1844_v61  ;;  %v1877_v41 = vmul.f32 1.442695, %v1868_v9  ;;  %v1901_v52 = vmul.f32 1.442695, %v1892_v49  ;;  %v1843_v34 = vsub.f32 %v1531_v28, %v1835_v20 }
 0x1ec   : > { %v1867_v58 = vsub.f32 %v1660_v11, %v1835_v20  ;;  %v1891_v32 = vsub.f32 %v1789_v54, %v1835_v20  ;;  %v1838_v36 = vmax.f32 %v1830_v31, %v1804_v10  ;;  %v1829_v3 = vmax.f32 %v1541_v39, %v1670_v35  ;;  %v1679_v46 = vpop.f32.mrf.mxu1 }
 0x1ed   : > { %2687 = vpow2.f32 %v1853_v38  ;;  %v1851_v48 = vmul.f32 1.442695, %v1843_v34  ;;  %v1685_v50 = vadd.f32 %v2553_v2, %v1424_v27  ;;  %v1432_v28 = vadd.f32 %v3376_v44, %v1367_v37 }
 0x1ee   : > { %2689 = vpow2.f32 %v1877_v41  ;;  %v1875_v30 = vmul.f32 1.442695, %v1867_v58  ;;  %v1899_v15 = vmul.f32 1.442695, %v1891_v32  ;;  %v1846_v22 = vsub.f32 %v1546_v7, %v1838_v36  ;;  %v2556_v21 = vpop.f32.mrf.mxu1 }
 0x1ef   : > { %2691 = vpow2.f32 %v1901_v52  ;;  %v1870_v6 = vsub.f32 %v1675_v14, %v1838_v36  ;;  %v1894_v13 = vsub.f32 %v1804_v10, %v1838_v36  ;;  %v1837_v29 = vmax.f32 %v1829_v3, %v1799_v33 }
 0x1f0   : > { %v1556_v11 = vadd.f32 %v3378_v17, %v1424_v27  ;;  %2693 = vpow2.f32 %v1851_v48  ;;  %v1857_v54 = vmul.f32 1.442695, %v1846_v22  ;;  %v1689_v19 = vpop.f32.mrf.mxu1  ;;  %v1680_v7 = vadd.f32 %v1679_v46, %v3388_v5 }
 0x1f1   : > { %2695 = vpow2.f32 %v1875_v30  ;;  %v1881_v42 = vmul.f32 1.442695, %v1870_v6  ;;  %v1905_v25 = vmul.f32 1.442695, %v1894_v13  ;;  %v1845_v47 = vsub.f32 %v1541_v39, %v1837_v29 }
 0x1f2   : > { %2697 = vpow2.f32 %v1899_v15  ;;  %v1869_v61 = vsub.f32 %v1670_v35, %v1837_v29  ;;  %v1832_v9 = vmax.f32 %v1556_v11, %v1685_v50  ;;  %v2573_v49 = vpop.f32.mrf.mxu1  ;;  %v1893_v20 = vsub.f32 %v1799_v33, %v1837_v29 }
 0x1f3   : > { %2699 = vpow2.f32 %v1857_v54  ;;  %v1855_v14 = vmul.f32 1.442695, %v1845_v47  ;;  %v1814_v10 = vadd.f32 %v2573_v49, %v1424_v27  ;;  %v1429_v44 = vadd.f32 %v3374_v40, %v1364_v62 }
 0x1f4   : > { %v1551_v17 = vadd.f32 %v3380_v63, %v3388_v5  ;;  %2701 = vpow2.f32 %v1881_v42  ;;  %v1879_v37 = vmul.f32 1.442695, %v1869_v61  ;;  %v1808_v23 = vpop.f32.mrf.mxu1  ;;  %v1695_v39 = vadd.f32 %v2556_v21, %v1432_v28 }
 0x1f5   : > { %2703 = vpow2.f32 %v1905_v25  ;;  %v1840_v31 = vmax.f32 %v1832_v9, %v1814_v10  ;;  %v1809_v35 = vadd.f32 %v1808_v23, %v3388_v5  ;;  %v1566_v2 = vadd.f32 %v3382_v8, %v1432_v28 }
 0x1f6   : > { %2705 = vpow2.f32 %v1855_v14  ;;  %v1831_v38 = vmax.f32 %v1551_v17, %v1680_v7  ;;  %v1690_v41 = vadd.f32 %v1689_v19, %v1429_v44  ;;  %v2576_v52 = vpop.f32.mrf.mxu1  ;;  %v1903_v27 = vmul.f32 1.442695, %v1893_v20 }
 0x1f7   : > { %2707 = vpow2.f32 %v1879_v37  ;;  %v1848_v40 = vsub.f32 %v1556_v11, %v1840_v31  ;;  %v1872_v62 = vsub.f32 %v1685_v50, %v1840_v31  ;;  %v1561_v63 = vadd.f32 %v3384_v55, %v1429_v44 }
 0x1f8   : > { %v1839_v34 = vmax.f32 %v1831_v38, %v1809_v35  ;;  %v3400_v58 = vadd.f32 %v2576_v52, %v1432_v28  ;;  %v1818_v32 = vpop.f32.mrf.mxu1  ;;  %v1834_v36 = vmax.f32 %v1566_v2, %v1695_v39  ;;  %v1896_v8 = vsub.f32 %v1814_v10, %v1840_v31 }
 0x1f9   : > { %v1861_v3 = vmul.f32 1.442695, %v1848_v40  ;;  %v1885_v46 = vmul.f32 1.442695, %v1872_v62  ;;  %v1819_v5 = vadd.f32 %v1818_v32, %v1429_v44  ;;  %2709 = vpow2.f32 %v1903_v27 }
 0x1fa   : > { %v3402_v33 = vpop.eup %2687  ;;  %v1847_v48 = vsub.f32 %v1551_v17, %v1839_v34  ;;  %v1871_v30 = vsub.f32 %v1680_v7, %v1839_v34  ;;  %v1833_v22 = vmax.f32 %v1561_v63, %v1690_v41  ;;  %v1895_v21 = vsub.f32 %v1809_v35, %v1839_v34 }
 0x1fb   : > { %v2690_v15 = vpop.eup %2689  ;;  %v1842_v50 = vmax.f32 %v1834_v36, %v3400_v58  ;;  %2711 = vpow2.f32 %v1861_v3  ;;  %v1909_v42 = vmul.f32 1.442695, %v1896_v8 }
 0x1fc   : > { %v3405_v55 = vpop.eup %2691  ;;  %v1916_v6 = vadd.f32 %v2690_v15, %v3402_v33  ;;  %v1859_v13 = vmul.f32 1.442695, %v1847_v48  ;;  %v1883_v29 = vmul.f32 1.442695, %v1871_v30  ;;  %2713 = vpow2.f32 %v1885_v46 }
 0x1fd   : > { %v3408_v28 = vpop.eup %2693  ;;  %v1841_v11 = vmax.f32 %v1833_v22, %v1819_v5  ;;  %v1850_v61 = vsub.f32 %v1566_v2, %v1842_v50  ;;  %v1907_v7 = vmul.f32 1.442695, %v1895_v21  ;;  %v1874_v49 = vsub.f32 %v1695_v39, %v1842_v50 }
 0x1fe   : > { %v3410_v54 = vpop.eup %2695  ;;  %v1924_v19 = vadd.f32 %v3405_v55, %v1916_v6  ;;  %2715 = vpow2.f32 %v1859_v13  ;;  %v1898_v40 = vsub.f32 %v3400_v58, %v1842_v50 }
 0x1ff   : > { %v3413_v25 = vpop.eup %2697  ;;  %v1915_v47 = vadd.f32 %v3410_v54, %v3408_v28  ;;  %2717 = vpow2.f32 %v1883_v29  ;;  %v1849_v10 = vsub.f32 %v1561_v63, %v1841_v11  ;;  %v1873_v37 = vsub.f32 %v1690_v41, %v1841_v11 }
 0x200   : > { %v2700_v9 = vpop.eup %2699  ;;  %2719 = vrcp.f32 %v1924_v19  ;;  %v1865_v31 = vmul.f32 1.442695, %v1850_v61  ;;  %v1889_v39 = vmul.f32 1.442695, %v1874_v49  ;;  %v1897_v62 = vsub.f32 %v1819_v5, %v1841_v11 }
 0x201   : > { %v3417_v14 = vpop.eup %2701  ;;  %v1923_v20 = vadd.f32 %v3413_v25, %v1915_v47  ;;  %2721 = vpow2.f32 %v1909_v42  ;;  %v1863_v38 = vmul.f32 1.442695, %v1849_v10  ;;  %v1887_v27 = vmul.f32 1.442695, %v1873_v37 }
 0x202   : > { %v3420_v44 = vpop.eup %2703  ;;  %v1918_v17 = vadd.f32 %v3417_v14, %v2700_v9  ;;  %v1913_v3 = vmul.f32 1.442695, %v1898_v40  ;;  %v1911_v8 = vmul.f32 1.442695, %v1897_v62 }
 0x203   : > { %v3423_v23 = vpop.eup %2705  ;;  %2723 = vrcp.f32 %v1923_v20 }
 0x204   : > { %v3425_v35 = vpop.eup %2707  ;;  %v1926_v2 = vadd.f32 %v3420_v44, %v1918_v17  ;;  %2725 = vpow2.f32 %v1907_v7 }
 0x205   : > { %v1917_v52 = vadd.f32 %v3425_v35, %v3423_v23 }
 0x206   : > { %2727 = vrcp.f32 %v1926_v2  ;;  %v2710_v41 = vpop.eup %2709 }
 0x207   : > { %2729 = vpow2.f32 %v1865_v31  ;;  %v1925_v32 = vadd.f32 %v2710_v41, %v1917_v52 }
 0x208   : > { %2731 = vpow2.f32 %v1889_v39  ;;  %v2712_v63 = vpop.eup %2711 }
 0x209   : > { %2733 = vpow2.f32 %v1863_v38  ;;  %v3431_v34 = vpop.eup %2713 }
 0x20a   : > { %2735 = vpow2.f32 %v1887_v27  ;;  %v1920_v30 = vadd.f32 %v3431_v34, %v2712_v63 }
 0x20b   : > { %v2716_v36 = vpop.eup %2715  ;;  %2737 = vrcp.f32 %v1925_v32 }
 0x20c   : > { %v2718_v46 = vpop.eup %2717  ;;  %2739 = vpow2.f32 %v1913_v3 }
 0x20d   : > { %v2720_v48 = vpop.eup %2719  ;;  %v1919_v22 = vadd.f32 %v2718_v46, %v2716_v36  ;;  %2741 = vpow2.f32 %v1911_v8 }
 0x20e   : > { %v1996_v21 = vmul.f32 %v2720_v48, %v2690_v15  ;;  %v1940_v58 = vmul.f32 %v2720_v48, %v3402_v33  ;;  %v2722_v50 = vpop.eup %2721  ;;  %v2060_v11 = vmul.f32 %v2720_v48, %v3405_v55 }
 0x20f   : > { %v1928_v13 = vadd.f32 %v2722_v50, %v1920_v30 }
 0x210   : > { %v2724_v5 = vpop.eup %2723  ;;  %2010 = vperm.xlu1 %2595, %v1996_v21   ;;  %1954 = vperm.xlu0 %2594, %v1940_v58   ;;  %v3562_v58 = vmax.f32 %v3229_v51, 0.0  ;;  %v3564_v51 = vmax.f32 %v3282_v45, 0.0 }
 0x211   : > { %v2726_v6 = vpop.eup %2725  ;;  %v1939_v19 = vmul.f32 %v2724_v5, %v3408_v28  ;;  %2743 = vrcp.f32 %v1928_v13  ;;  %v1995_v7 = vmul.f32 %v2724_v5, %v3410_v54  ;;  %v2059_v28 = vmul.f32 %v2724_v5, %v3413_v25 }
 0x212   : > { %v1927_v29 = vadd.f32 %v2726_v6, %v1919_v22  ;;  %v3561_v22 = vmax.f32 %v3289_v53, 0.0 }
 0x213   : > { %v2728_v42 = vpop.eup %2727 }
 0x214   : > { %v2730_v47 = vpop.eup %2729  ;;  %2074 = vperm.xlu1 %2595, %v2060_v11   ;;  %1949 = vperm.xlu0 %2594, %v1939_v19   ;;  %2745 = vrcp.f32 %v1927_v29  ;;  %v1942_v61 = vmul.f32 %v2728_v42, %v2700_v9  ;;  %v1998_v55 = vmul.f32 %v2728_v42, %v3417_v14  ;;  %v2062_v9 = vmul.f32 %v2728_v42, %v3420_v44 }
 0x215   : > { %v2732_v15 = vpop.eup %2731  ;;  %v3563_v29 = vunpack.c.h.bf16 %v3197_v1 }
 0x216   : > { %v2734_v33 = vpop.eup %2733  ;;  %v1922_v20 = vadd.f32 %v2732_v15, %v2730_v47 }
 0x217   : > { %v2736_v49 = vpop.eup %2735 }
 0x218   : > { %1964 = vperm.xlu1 %2595, %v1942_v61   ;;  %2005 = vperm.xlu0 %2594, %v1995_v7   ;;  %v1921_v10 = vadd.f32 %v2736_v49, %v2734_v33  ;;  %v2738_v17 = vpop.eup %2737 }
 0x219   : > { %v2740_v37 = vpop.eup %2739  ;;  %v1997_v54 = vmul.f32 %v2738_v17, %v3425_v35  ;;  %v1941_v14 = vmul.f32 %v2738_v17, %v3423_v23  ;;  %v2061_v52 = vmul.f32 %v2738_v17, %v2710_v41  ;;  %v3568_v17 = vmax.f32 %v3246_v4, 0.0 }
 0x21a   : > { %v2742_v31 = vpop.eup %2741  ;;  %v1930_v2 = vadd.f32 %v2740_v37, %v1922_v20  ;;  %v3566_v20 = vmax.f32 %v3303_v60, 0.0  ;;  %v3571_v4 = vmax.f32 %v3236_v59, 0.0 }
 0x21b   : > { %v1929_v39 = vadd.f32 %v2742_v31, %v1921_v10 }
 0x21c   : > { %2020 = vperm.xlu1 %2595, %v1998_v55   ;;  %2069 = vperm.xlu0 %2594, %v2059_v28   ;;  %2747 = vrcp.f32 %v1930_v2  ;;  %v3567_v55 = vunpack.c.l.bf16 %v3197_v1  ;;  %v3570_v1 = vmax.f32 %v3292_v56, 0.0 }
 0x21d   : > { %2749 = vrcp.f32 %v1929_v39 }
 0x21e   : > { %v2744_v38 = vpop.eup %2743 }
 0x21f   : > { %v1944_v27 = vmul.f32 %v2744_v38, %v2712_v63  ;;  %v2000_v62 = vmul.f32 %v2744_v38, %v3431_v34  ;;  %v2064_v32 = vmul.f32 %v2744_v38, %v2722_v50 }
 0x220   : > { %2084 = vperm.xlu1 %2595, %v2062_v9   ;;  %2015 = vperm.xlu0 %2594, %v1997_v54  }
 0x221   : > { %v2746_v25 = vpop.eup %2745 }
 0x222   : > { %v1943_v40 = vmul.f32 %v2746_v25, %v2716_v36  ;;  %v1999_v44 = vmul.f32 %v2746_v25, %v2718_v46  ;;  %v2063_v3 = vmul.f32 %v2746_v25, %v2726_v6 }
 0x224   : > { %1959 = vperm.xlu1 %2595, %v1941_v14   ;;  %2079 = vperm.xlu0 %2594, %v2061_v52  }
 0x228   : > { %1974 = vperm.xlu1 %2595, %v1944_v27   ;;  %1969 = vperm.xlu0 %2594, %v1943_v40   ;;  %v3572_v27 = vunpack.c.l.bf16 %v3205_v26 }
 0x229   : > { %v2748_v35 = vpop.eup %2747 }
 0x22a   : > { %v2750_v8 = vpop.eup %2749  ;;  %v1946_v23 = vmul.f32 %v2748_v35, %v2730_v47  ;;  %v2002_v63 = vmul.f32 %v2748_v35, %v2732_v15  ;;  %v2066_v48 = vmul.f32 %v2748_v35, %v2740_v37  ;;  %v3565_v15 = vmax.f32 %v3225_v43, 0.0 }
 0x22b   : > { %v1945_v41 = vmul.f32 %v2750_v8, %v2734_v33  ;;  %v2001_v36 = vmul.f32 %v2750_v8, %v2736_v49  ;;  %v2065_v34 = vmul.f32 %v2750_v8, %v2742_v31  ;;  %v3569_v43 = vunpack.c.h.bf16 %v3205_v26 }
 0x22c   : > { %2030 = vperm.xlu1 %2595, %v2000_v62   ;;  %2025 = vperm.xlu0 %2594, %v1999_v44   ;;  %v3573_v8 = vmax.f32 %v3310_v0, 0.0  ;;  %v3576_v26 = vmax.f32 %v3257_v12, 0.0  ;;  %v3578_v0 = vunpack.c.l.bf16 %v3336_v18 }
 0x230   : > { %2094 = vperm.xlu1 %2595, %v2064_v32   ;;  %2089 = vperm.xlu0 %2594, %v2063_v3  }
 0x234   : > { %1984 = vperm.xlu1 %2595, %v1946_v23   ;;  %1979 = vperm.xlu0 %2594, %v1945_v41   ;;  %v3574_v23 = vmax.f32 %v3301_v57, 0.0  ;;  %v3575_v41 = vmax.f32 %v3265_v24, 0.0 }
 0x238   : > { %2040 = vperm.xlu1 %2595, %v2002_v63   ;;  %2035 = vperm.xlu0 %2594, %v2001_v36  }
 0x23c   : > { %2104 = vperm.xlu1 %2595, %v2066_v48   ;;  %2099 = vperm.xlu0 %2594, %v2065_v34  }
 0x28b   : > { %v2011_v46 = vpop.permute.xlu1 %2010  ;;  %v1955_v30 = vpop.permute.xlu0 %1954 }
 0x28c   : > { %v2044_v21 = vmul.f32 %v2011_v46, %v3561_v22  ;;  %v1988_v50 = vmul.f32 %v1955_v30, %v3562_v58  ;;  %v3577_v22 = vunpack.c.h.bf16 %v3336_v18  ;;  %v3582_v18 = vld [vmem:[#allocation4_spill] sm:$0xff] }
 0x28e   : > { %v2052_v13 = vadd.f32 %v2044_v21, %v1988_v50 }
 0x28f   : > { %v2075_v5 = vpop.permute.xlu1 %2074  ;;  %v1950_v6 = vpop.permute.xlu0 %1949 }
 0x290   : > { %v2108_v11 = vmul.f32 %v3563_v29, %v2075_v5  ;;  %v1987_v33 = vmul.f32 %v1950_v6, %v3565_v15 }
 0x292   : > { %v2116_v19 = vadd.f32 %v2108_v11, %v2052_v13  ;;  %v3579_v13 = vmax.f32 %v3332_v16, 0.0  ;;  %v3580_v11 = vld [vmem:[#allocation5_spill] sm:$0xff] }
 0x293   : > { %v1965_v53 = vpop.permute.xlu1 %1964  ;;  %v2006_v42 = vpop.permute.xlu0 %2005 }
 0x294   : > { %2124 = vst.msk [vmem:[%s3454_s16 + $0x8] sm:$0xff] %vm1439_vm2, %v2116_v19  ;;  %v2043_v47 = vmul.f32 %v2006_v42, %v3564_v51  ;;  %v1990_v37 = vmul.f32 %v1965_v53, %v3568_v17  ;;  %v3581_v19 = vmax.f32 %v3580_v11, 0.0  ;;  %v3583_v42 = vmax.f32 %v3582_v18, 0.0 }
 0x296   : > { %v2051_v49 = vadd.f32 %v2043_v47, %v1987_v33  ;;  %v3584_v47 = vld [vmem:[#allocation3_spill] sm:$0xff] }
 0x297   : > { %v2021_v61 = vpop.permute.xlu1 %2020  ;;  %v2070_v7 = vpop.permute.xlu0 %2069  ;;  %v3585_v15 = vmax.f32 %v3584_v47, 0.0 }
 0x298   : > { %v2046_v10 = vmul.f32 %v2021_v61, %v3566_v20  ;;  %v2107_v28 = vmul.f32 %v3567_v55, %v2070_v7 }
 0x29a   : > { %v2115_v31 = vadd.f32 %v2107_v28, %v2051_v49  ;;  %v2054_v39 = vadd.f32 %v2046_v10, %v1990_v37  ;;  %v3586_v10 = vld [vmem:[#allocation6_spill] sm:$0xff] }
 0x29b   : > { %v2085_v2 = vpop.permute.xlu1 %2084  ;;  %v2016_v45 = vpop.permute.xlu0 %2015  ;;  %v3587_v55 = vunpack.c.h.bf16 %v3586_v10  ;;  %v3588_v17 = vunpack.c.l.bf16 %v3586_v10 }
 0x29c   : > { %2123 = vst.msk [vmem:[%s3454_s16] sm:$0xff] %vm1439_vm2, %v2115_v31  ;;  %v2110_v9 = vmul.f32 %v3569_v43, %v2085_v2  ;;  %v2045_v14 = vmul.f32 %v2016_v45, %v3570_v1 }
 0x29e   : > { %v2118_v54 = vadd.f32 %v2110_v9, %v2054_v39 }
 0x29f   : > { %v1960_v38 = vpop.permute.xlu1 %1959  ;;  %v2080_v60 = vpop.permute.xlu0 %2079 }
 0x2a0   : > { %2126 = vst.msk [vmem:[%s3454_s16 + $0x18] sm:$0xff] %vm1439_vm2, %v2118_v54  ;;  %v1989_v52 = vmul.f32 %v1960_v38, %v3571_v4  ;;  %v2109_v40 = vmul.f32 %v3572_v27, %v2080_v60 }
 0x2a2   : > { %v2053_v25 = vadd.f32 %v2045_v14, %v1989_v52 }
 0x2a3   : > { %v1975_v62 = vpop.permute.xlu1 %1974  ;;  %v1970_v44 = vpop.permute.xlu0 %1969 }
 0x2a4   : > { %v2117_v35 = vadd.f32 %v2109_v40, %v2053_v25  ;;  %v1992_v63 = vmul.f32 %v1975_v62, %v3575_v41  ;;  %v1991_v36 = vmul.f32 %v1970_v44, %v3576_v26 }
 0x2a6   : > { %2125 = vst.msk [vmem:[%s3454_s16 + $0x10] sm:$0xff] %vm1439_vm2, %v2117_v35 }
 0x2a7   : > { %v2031_v32 = vpop.permute.xlu1 %2030  ;;  %v2026_v3 = vpop.permute.xlu0 %2025 }
 0x2a8   : > { %v2048_v56 = vmul.f32 %v2031_v32, %v3573_v8  ;;  %v2047_v59 = vmul.f32 %v2026_v3, %v3574_v23 }
 0x2aa   : > { %v2056_v46 = vadd.f32 %v2048_v56, %v1992_v63  ;;  %v2055_v30 = vadd.f32 %v2047_v59, %v1991_v36 }
 0x2ab   : > { %v2095_v48 = vpop.permute.xlu1 %2094  ;;  %v2090_v34 = vpop.permute.xlu0 %2089 }
 0x2ac   : > { %v2112_v21 = vmul.f32 %v3577_v22, %v2095_v48  ;;  %v2111_v58 = vmul.f32 %v3578_v0, %v2090_v34 }
 0x2ae   : > { %v2120_v50 = vadd.f32 %v2112_v21, %v2056_v46  ;;  %v2119_v5 = vadd.f32 %v2111_v58, %v2055_v30 }
 0x2af   : > { %v1985_v57 = vpop.permute.xlu1 %1984  ;;  %v1980_v6 = vpop.permute.xlu0 %1979 }
 0x2b0   : > { %2128 = vst.msk [vmem:[%s3454_s16 + $0x28] sm:$0xff] %vm1439_vm2, %v2120_v50  ;;  %2127 = vst.msk [vmem:[%s3454_s16 + $0x20] sm:$0xff] %vm1439_vm2, %v2119_v5  ;;  %v1994_v51 = vmul.f32 %v1985_v57, %v3583_v42  ;;  %v1993_v33 = vmul.f32 %v1980_v6, %v3585_v15 }
 0x2b3   : > { %v2041_v12 = vpop.permute.xlu1 %2040  ;;  %v2036_v24 = vpop.permute.xlu0 %2035 }
 0x2b4   : > { %v2050_v29 = vmul.f32 %v2041_v12, %v3579_v13  ;;  %v2049_v53 = vmul.f32 %v2036_v24, %v3581_v19 }
 0x2b6   : > { %v2058_v49 = vadd.f32 %v2050_v29, %v1994_v51  ;;  %v2057_v20 = vadd.f32 %v2049_v53, %v1993_v33 }
 0x2b7   : > { %v2105_v61 = vpop.permute.xlu1 %2104  ;;  %v2100_v7 = vpop.permute.xlu0 %2099 }
 0x2b8   : > { %v2114_v28 = vmul.f32 %v3587_v55, %v2105_v61  ;;  %v2113_v16 = vmul.f32 %v3588_v17, %v2100_v7 }
 0x2ba   : > { %v2122_v37 = vadd.f32 %v2114_v28, %v2058_v49  ;;  %v2121_v31 = vadd.f32 %v2113_v16, %v2057_v20 }
 0x2bc   : > { %2130 = vst.msk [vmem:[%s3454_s16 + $0x38] sm:$0xff] %vm1439_vm2, %v2122_v37  ;;  %2129 = vst.msk [vmem:[%s3454_s16 + $0x30] sm:$0xff] %vm1439_vm2, %v2121_v31 }
 0x2bd PF: > { %s21_s15 = sadd.s32 1, %s2757_s15  }
 0x2be   : > { %p18_p4 = scmp.ge.s32.totalorder %s21_s15, 4  }
 0x2c0   :  { %20 = sbr.rel (!%p18_p4) target bundleno = 2 (0x2), region = 96 }

</bundles_post_ra>
